<compile_context>
chip_gen: v6e
topology: v6e:2x2x1
jax: 0.10.0
libtpu: 0.0.40
codegen_flags: <defaults>
</compile_context>

<pallas_src>
import functools

import jax
import jax.numpy as jnp
from jax import lax
from jax.experimental import pallas as pl
from jax.experimental.pallas import tpu as pltpu

# Layer dims of SimpleNet: 42 -> 16 -> 32 -> 64 -> 1.
_IN = 42
_H1, _H2, _H3 = 16, 32, 64

# Row layout of the packed parameter slab (f32, shape (_P_ROWS, _P_COLS)).
# Each section starts on a multiple of 8 rows (sublane-aligned slices).
_W1_R = 0      # rows   0..41 , cols 0..15 : W1 (42, 16)
_W2_R = 48     # rows  48..63 , cols 0..31 : W2 (16, 32)
_W3_R = 64     # rows  64..95 , cols 0..63 : W3 (32, 64)
_W4_R = 96     # rows  96..103, cols 0..63 : row 96 = W4^T (1, 64); rows 97..103 zero pad
_B_R = 104     # row 104: b1, row 105: b2, row 106: b3, row 107: b4 (col 0)
_P_ROWS = 112  # multiple of 8
_P_COLS = 128  # one lane tile wide


def _sigmoid(x):
    # exp and the approximate reciprocal both execute on the EUP slot, keeping the VALU free.
    return pl.reciprocal(1.0 + jnp.exp(-x), approx=True)


def simplenet_kernel(x_ref, p_ref, o_ref):
    """One TB-row batch tile of the fused 4-layer MLP."""
    x = x_ref[...]                                           # (TB, 42)

    # Layers 1-3 on the MXU (batch on sublanes, features on lanes).
    w1 = p_ref[_W1_R:_W1_R + _IN, 0:_H1]                     # (42, 16)
    b1 = p_ref[_B_R + 0:_B_R + 1, 0:_H1]                     # (1, 16)
    h1 = _sigmoid(jnp.dot(x, w1, preferred_element_type=jnp.float32) + b1)

    w2 = p_ref[_W2_R:_W2_R + _H1, 0:_H2]                     # (16, 32)
    b2 = p_ref[_B_R + 1:_B_R + 2, 0:_H2]                     # (1, 32)
    h2 = _sigmoid(jnp.dot(h1, w2, preferred_element_type=jnp.float32) + b2)

    w3 = p_ref[_W3_R:_W3_R + _H2, 0:_H3]                     # (32, 64)
    b3 = p_ref[_B_R + 2:_B_R + 3, 0:_H3]                     # (1, 64)
    h3 = _sigmoid(jnp.dot(h2, w3, preferred_element_type=jnp.float32) + b3)

    # Layer 4 (out_features == 1): contract W4^T against h3's feature axis (NT-form dot_general)
    # so the result lands as (rows, TB) with the batch already on lanes -> lane-dense store.
    # Rows 1..7 of the W4 block are zero padding; only row 0 of z4 is used.
    w4t = p_ref[_W4_R:_W4_R + 8, 0:_H3]                      # (8, 64); row 0 = W4^T
    b4 = p_ref[_B_R + 3:_B_R + 4, 0:1]                       # (1, 1) scalar bias
    z4 = lax.dot_general(w4t, h3, (((1,), (1,)), ((), ())),
                         preferred_element_type=jnp.float32)  # (8, TB)
    y = _sigmoid(z4[0:1, :] + b4)                            # (1, TB)

    o_ref[...] = y.reshape(o_ref.shape)                      # (1, 1, TB), lane-dense


@functools.partial(jax.jit, static_argnames=("tb",))
def simplenet_forward(x, packed_params, *, tb=512):
    """x: (B, 42) f32; packed_params: (_P_ROWS, _P_COLS) f32 from pack_params()."""
    assert x.shape[1] == _IN
    assert tb % 128 == 0
    B = x.shape[0]
    grid = (B + tb - 1) // tb                 # number of batch tiles
    b_pad = grid * tb
    x_pad = jnp.pad(x.astype(jnp.float32), ((0, b_pad - B), (0, 0)))

    out = pl.pallas_call(
        simplenet_kernel,
        out_shape=jax.ShapeDtypeStruct((grid, 1, tb), jnp.float32),
        grid=(grid,),
        in_specs=[
            # Streamed / double-buffered batch tile of activations.
            pl.BlockSpec((tb, _IN), lambda i: (i, 0)),
            # Packed parameter slab: same block every step -> stays VMEM-resident.
            pl.BlockSpec((_P_ROWS, _P_COLS), lambda i: (0, 0)),
        ],
        # One (1, TB) row per tile: batch on lanes -> unmasked lane-dense stores.
        out_specs=pl.BlockSpec((1, 1, tb), lambda i: (i, 0, 0)),
        compiler_params=pltpu.CompilerParams(
            # Independent batch tiles: shard grid across v7x's 2 TCs; harmless on v5e/v6e.
            dimension_semantics=("parallel",),
            # Explicit budget, tiny vs. 64 MiB (v7x) / 128 MiB (v5e/v6e) physical VMEM.
            vmem_limit_bytes=32 * 1024 * 1024,
        ),
    )(x_pad, packed_params)

    # (G, 1, TB) -> (B, 1): lane j of tile g is batch row g*TB + j.
    return out.reshape(b_pad)[:B].reshape(B, 1)


def init_params(key):
    """PyTorch nn.Linear default init: U(-k, k), k = 1/sqrt(fan_in).

    Weights stored as (in_features, out_features); biases as (out_features,).
    """
    dims = [(_IN, _H1), (_H1, _H2), (_H2, _H3), (_H3, 1)]
    params = []
    for fan_in, fan_out in dims:
        key, kw, kb = jax.random.split(key, 3)
        bound = 1.0 / (fan_in ** 0.5)
        w = jax.random.uniform(kw, (fan_in, fan_out), jnp.float32, -bound, bound)
        b = jax.random.uniform(kb, (fan_out,), jnp.float32, -bound, bound)
        params.append((w, b))
    return params


def pack_params(params):
    """Pack the 4 weights + 4 biases into one lane-padded (112, 128) f32 slab."""
    (w1, b1), (w2, b2), (w3, b3), (w4, b4) = params
    p = jnp.zeros((_P_ROWS, _P_COLS), jnp.float32)
    p = p.at[_W1_R:_W1_R + _IN, 0:_H1].set(w1)
    p = p.at[_W2_R:_W2_R + _H1, 0:_H2].set(w2)
    p = p.at[_W3_R:_W3_R + _H2, 0:_H3].set(w3)
    p = p.at[_W4_R, 0:_H3].set(w4[:, 0])          # W4^T as a single row
    p = p.at[_B_R + 0, 0:_H1].set(b1)
    p = p.at[_B_R + 1, 0:_H2].set(b2)
    p = p.at[_B_R + 2, 0:_H3].set(b3)
    p = p.at[_B_R + 3, 0].set(b4[0])
    return p


def reference_forward(x, params):
    h = x
    for w, b in params:
        h = 1.0 / (1.0 + jnp.exp(-(h @ w + b)))
    return h


if __name__ == "__main__":
    key = jax.random.PRNGKey(0)
    key, kx_small, kx_big = jax.random.split(key, 3)

    params = init_params(key)
    packed = pack_params(params)

    # B=8: single padded tile.  B=1000: two tiles (exercises the grid + padding path).
    for batch, kx in ((8, kx_small), (1000, kx_big)):
        x = jax.random.normal(kx, (batch, _IN), jnp.float32)
        out = jax.block_until_ready(simplenet_forward(x, packed, tb=512))
        ref = reference_forward(x, params)
        assert out.shape == (batch, 1)
        # The in-kernel sigmoid uses the EUP's approximate reciprocal, so allow ~1e-3-level
        # deviation from the exact-arithmetic reference; 2e-2 is a generous bound that still
        # catches any structural / packing / indexing bug.
        assert jnp.allclose(out, ref, atol=2e-2), (
            f"mismatch at B={batch}: max |diff| = {jnp.max(jnp.abs(out - ref))}")

    print("KERNEL_OK")
</pallas_src>

<mosaic_0001>
module attributes {stable_mosaic.version = 11 : i64} {
  func.func @simplenet_kernel(%arg0: i32, %arg1: memref<512x42xf32, #tpu.memory_space<vmem>>, %arg2: memref<112x128xf32, #tpu.memory_space<vmem>>, %arg3: memref<1x1x512xf32, #tpu.memory_space<vmem>>) attributes {dimension_semantics = [#tpu.dimension_semantics<parallel>], iteration_bounds = array<i64: 1>, scalar_prefetch = 0 : i64, scratch_operands = 0 : i64, tpu.core_type = #tpu.core_type<tc>, window_params = [{transform_indices = @transform_0, window_bounds = array<i64: 512, 42>}, {pipeline_mode = #tpu.pipeline_mode<synchronous>, transform_indices = @transform_1, window_bounds = array<i64: 112, 128>}, {transform_indices = @transform_2, window_bounds = array<i64: 1, 1, 512>}]} {
    %c0 = arith.constant 0 : index
    %c0_0 = arith.constant 0 : index
    %0 = vector.load %arg1[%c0, %c0_0] : memref<512x42xf32, #tpu.memory_space<vmem>>, vector<512x42xf32>
    %c0_1 = arith.constant 0 : index
    %c0_2 = arith.constant 0 : index
    %1 = vector.load %arg2[%c0_1, %c0_2] : memref<112x128xf32, #tpu.memory_space<vmem>>, vector<42x16xf32>
    %c104 = arith.constant 104 : index
    %c0_3 = arith.constant 0 : index
    %2 = vector.load %arg2[%c104, %c0_3] : memref<112x128xf32, #tpu.memory_space<vmem>>, vector<1x16xf32>
    %cst = arith.constant dense<0.000000e+00> : vector<512x16xf32>
    %3 = tpu.matmul %0, %1, %cst {dimension_numbers = #tpu.dot_dimension_numbers<[1], [0], [0], [1], [0, 0, 1, 1], [], []>} : vector<512x42xf32>, vector<42x16xf32>, vector<512x16xf32> -> vector<512x16xf32>
    %4 = vector.broadcast %2 : vector<1x16xf32> to vector<512x16xf32>
    %5 = arith.addf %3, %4 : vector<512x16xf32>
    %cst_4 = arith.constant 0.000000e+00 : f32
    %6 = vector.broadcast %cst_4 : f32 to vector<512x16xf32>
    %7 = arith.subf %6, %5 : vector<512x16xf32>
    %8 = math.exp %7 : vector<512x16xf32>
    %cst_5 = arith.constant 1.000000e+00 : f32
    %9 = vector.broadcast %cst_5 : f32 to vector<512x16xf32>
    %10 = arith.addf %9, %8 : vector<512x16xf32>
    %11 = tpu.reciprocal %10 {approx = true} : vector<512x16xf32> -> vector<512x16xf32>
    %c48 = arith.constant 48 : index
    %c0_6 = arith.constant 0 : index
    %12 = vector.load %arg2[%c48, %c0_6] : memref<112x128xf32, #tpu.memory_space<vmem>>, vector<16x32xf32>
    %c105 = arith.constant 105 : index
    %c0_7 = arith.constant 0 : index
    %13 = vector.load %arg2[%c105, %c0_7] : memref<112x128xf32, #tpu.memory_space<vmem>>, vector<1x32xf32>
    %cst_8 = arith.constant dense<0.000000e+00> : vector<512x32xf32>
    %14 = tpu.matmul %11, %12, %cst_8 {dimension_numbers = #tpu.dot_dimension_numbers<[1], [0], [0], [1], [0, 0, 1, 1], [], []>} : vector<512x16xf32>, vector<16x32xf32>, vector<512x32xf32> -> vector<512x32xf32>
    %15 = vector.broadcast %13 : vector<1x32xf32> to vector<512x32xf32>
    %16 = arith.addf %14, %15 : vector<512x32xf32>
    %cst_9 = arith.constant 0.000000e+00 : f32
    %17 = vector.broadcast %cst_9 : f32 to vector<512x32xf32>
    %18 = arith.subf %17, %16 : vector<512x32xf32>
    %19 = math.exp %18 : vector<512x32xf32>
    %cst_10 = arith.constant 1.000000e+00 : f32
    %20 = vector.broadcast %cst_10 : f32 to vector<512x32xf32>
    %21 = arith.addf %20, %19 : vector<512x32xf32>
    %22 = tpu.reciprocal %21 {approx = true} : vector<512x32xf32> -> vector<512x32xf32>
    %c64 = arith.constant 64 : index
    %c0_11 = arith.constant 0 : index
    %23 = vector.load %arg2[%c64, %c0_11] : memref<112x128xf32, #tpu.memory_space<vmem>>, vector<32x64xf32>
    %c106 = arith.constant 106 : index
    %c0_12 = arith.constant 0 : index
    %24 = vector.load %arg2[%c106, %c0_12] : memref<112x128xf32, #tpu.memory_space<vmem>>, vector<1x64xf32>
    %cst_13 = arith.constant dense<0.000000e+00> : vector<512x64xf32>
    %25 = tpu.matmul %22, %23, %cst_13 {dimension_numbers = #tpu.dot_dimension_numbers<[1], [0], [0], [1], [0, 0, 1, 1], [], []>} : vector<512x32xf32>, vector<32x64xf32>, vector<512x64xf32> -> vector<512x64xf32>
    %26 = vector.broadcast %24 : vector<1x64xf32> to vector<512x64xf32>
    %27 = arith.addf %25, %26 : vector<512x64xf32>
    %cst_14 = arith.constant 0.000000e+00 : f32
    %28 = vector.broadcast %cst_14 : f32 to vector<512x64xf32>
    %29 = arith.subf %28, %27 : vector<512x64xf32>
    %30 = math.exp %29 : vector<512x64xf32>
    %cst_15 = arith.constant 1.000000e+00 : f32
    %31 = vector.broadcast %cst_15 : f32 to vector<512x64xf32>
    %32 = arith.addf %31, %30 : vector<512x64xf32>
    %33 = tpu.reciprocal %32 {approx = true} : vector<512x64xf32> -> vector<512x64xf32>
    %c96 = arith.constant 96 : index
    %c0_16 = arith.constant 0 : index
    %34 = vector.load %arg2[%c96, %c0_16] : memref<112x128xf32, #tpu.memory_space<vmem>>, vector<8x64xf32>
    %c107 = arith.constant 107 : index
    %c0_17 = arith.constant 0 : index
    %35 = vector.load %arg2[%c107, %c0_17] : memref<112x128xf32, #tpu.memory_space<vmem>>, vector<1x1xf32>
    %cst_18 = arith.constant dense<0.000000e+00> : vector<8x512xf32>
    %36 = tpu.matmul %34, %33, %cst_18 {dimension_numbers = #tpu.dot_dimension_numbers<[1], [1], [0], [0], [0, 0, 1, 0], [], []>} : vector<8x64xf32>, vector<512x64xf32>, vector<8x512xf32> -> vector<8x512xf32>
    %37 = vector.extract_strided_slice %36 {offsets = [0, 0], sizes = [1, 512], strides = [1, 1]} : vector<8x512xf32> to vector<1x512xf32>
    %38 = vector.broadcast %35 : vector<1x1xf32> to vector<1x512xf32>
    %39 = arith.addf %37, %38 : vector<1x512xf32>
    %cst_19 = arith.constant 0.000000e+00 : f32
    %40 = vector.broadcast %cst_19 : f32 to vector<1x512xf32>
    %41 = arith.subf %40, %39 : vector<1x512xf32>
    %42 = math.exp %41 : vector<1x512xf32>
    %cst_20 = arith.constant 1.000000e+00 : f32
    %43 = vector.broadcast %cst_20 : f32 to vector<1x512xf32>
    %44 = arith.addf %43, %42 : vector<1x512xf32>
    %45 = tpu.reciprocal %44 {approx = true} : vector<1x512xf32> -> vector<1x512xf32>
    %46 = vector.shape_cast %45 : vector<1x512xf32> to vector<1x1x512xf32>
    %c0_21 = arith.constant 0 : index
    %c0_22 = arith.constant 0 : index
    %c0_23 = arith.constant 0 : index
    %47 = vector.load %arg3[%c0_21, %c0_22, %c0_23] : memref<1x1x512xf32, #tpu.memory_space<vmem>>, vector<1x1x512xf32>
    tpu.vector_store %arg3[%c0_21, %c0_22, %c0_23], %46 {strides = array<i32>} : memref<1x1x512xf32, #tpu.memory_space<vmem>>, vector<1x1x512xf32>,
    return
  }
  func.func @transform_0(%arg0: i32) -> (i32, i32) {
    %c0_i32 = arith.constant 0 : i32
    %c0_i32_0 = arith.constant 0 : i32
    return %arg0, %c0_i32 : i32, i32
  }
  func.func @transform_1(%arg0: i32) -> (i32, i32) {
    %c0_i32 = arith.constant 0 : i32
    %c0_i32_0 = arith.constant 0 : i32
    %c0_i32_1 = arith.constant 0 : i32
    return %c0_i32, %c0_i32_0 : i32, i32
  }
  func.func @transform_2(%arg0: i32) -> (i32, i32, i32) {
    %c0_i32 = arith.constant 0 : i32
    %c0_i32_0 = arith.constant 0 : i32
    %c0_i32_1 = arith.constant 0 : i32
    return %arg0, %c0_i32, %c0_i32_0 : i32, i32, i32
  }
}

</mosaic_0001>

<bundles_post_ra>
// kernel: simplenet_forward.1
= control target key start
LH: loop header
LB: loop body
LE: loop exit
PB: predicated region body
PF: predicated region fallthrough
CT: control target
= control target key end

     0   :  { %vm279_vm0 = vcmask 1041408   ;;  %vm86_vm1 = vcmask 343040   ;;  %vm995_vm2 = vcmask 130048   ;;  %vm1902_vm3 = vcmask 261120   ;;  %s5707_s1 = inlined_call_operand.vmem [shape: f32[112,128], index: 1, kind: input, shape index: {}]   ;;  %s5708_s0 = inlined_call_operand.vmem [shape: f32[512,42], index: 0, kind: input, shape index: {}]   ;;  %s5709_s2 = inlined_call_operand.vmem [shape: f32[1,1,512], index: 2, kind: output, shape index: {}]  }
   0x1   :  { %v80_v0 = vld [vmem:[%s5707_s1 + $0x28] sm:$0x3]  ;;  %v79_v1 = vld [vmem:[%s5707_s1 + $0x20] sm:$0xff]  ;;  %v78_v2 = vld [vmem:[%s5707_s1 + $0x18] sm:$0xff]  ;;  %vm2802_vm4 = vcmask 523264  }
   0x2   :  { %3741 = vmatprep.subr.msk.mxu0 %vm279_vm0, %v80_v0  ;;  %v11_v3 = vld [vmem:[%s5708_s0] sm:$0xff]  ;;  %v77_v4 = vld [vmem:[%s5707_s1 + $0x10] sm:$0xff]  ;;  %v76_v5 = vld [vmem:[%s5707_s1 + $0x8] sm:$0xff] }
   0x3   :  { %3742 = vmatpush3.msk.msra.mxu0 %vm279_vm0, %v80_v0  ;;  %3753 = vmatprep.mubr.msk.f32.mxu0 %vm86_vm1, %v11_v3  ;;  %v75_v6 = vld [vmem:[%s5707_s1] sm:$0xff]  ;;  %v12_v7 = vld [vmem:[%s5708_s0 + $0x8] sm:$0xff]  ;;  %v13_v8 = vld [vmem:[%s5708_s0 + $0x10] sm:$0xff] }
   0x4   :  { %3743 = vmatprep.subr.mxu0 %v79_v1  ;;  %v14_v9 = vld [vmem:[%s5708_s0 + $0x18] sm:$0xff]  ;;  %v15_v10 = vld [vmem:[%s5708_s0 + $0x20] sm:$0xff]  ;;  %v16_v11 = vld [vmem:[%s5708_s0 + $0x28] sm:$0xff] }
   0x5   :  { %3744 = vmatpush3.msra.mxu0 %v79_v1  ;;  %v17_v12 = vld [vmem:[%s5708_s0 + $0x30] sm:$0xff]  ;;  %v18_v13 = vld [vmem:[%s5708_s0 + $0x38] sm:$0xff]  ;;  %v19_v14 = vld [vmem:[%s5708_s0 + $0x40] sm:$0xff] }
   0x6   :  { %3745 = vmatprep.subr.mxu0 %v78_v2  ;;  %v20_v15 = vld [vmem:[%s5708_s0 + $0x48] sm:$0xff]  ;;  %v21_v16 = vld [vmem:[%s5708_s0 + $0x50] sm:$0xff]  ;;  %v22_v17 = vld [vmem:[%s5708_s0 + $0x58] sm:$0xff] }
   0x7   :  { %3746 = vmatpush3.msra.mxu0 %v78_v2  ;;  %v23_v18 = vld [vmem:[%s5708_s0 + $0x60] sm:$0xff]  ;;  %v24_v19 = vld [vmem:[%s5708_s0 + $0x68] sm:$0xff]  ;;  %v25_v20 = vld [vmem:[%s5708_s0 + $0x70] sm:$0xff] }
   0x8   :  { %3747 = vmatprep.subr.mxu0 %v77_v4  ;;  %v26_v21 = vld [vmem:[%s5708_s0 + $0x78] sm:$0xff]  ;;  %v27_v22 = vld [vmem:[%s5708_s0 + $0x80] sm:$0xff]  ;;  %v28_v23 = vld [vmem:[%s5708_s0 + $0x88] sm:$0xff] }
   0x9   :  { %3748 = vmatpush3.msra.mxu0 %v77_v4  ;;  %v29_v24 = vld [vmem:[%s5708_s0 + $0x90] sm:$0xff]  ;;  %v30_v25 = vld [vmem:[%s5708_s0 + $0x98] sm:$0xff]  ;;  %v31_v26 = vld [vmem:[%s5708_s0 + $0xa0] sm:$0xff] }
   0xa   :  { %3749 = vmatprep.subr.mxu0 %v76_v5  ;;  %v32_v27 = vld [vmem:[%s5708_s0 + $0xa8] sm:$0xff]  ;;  %v33_v28 = vld [vmem:[%s5708_s0 + $0xb0] sm:$0xff]  ;;  %v34_v29 = vld [vmem:[%s5708_s0 + $0xb8] sm:$0xff] }
   0xb   :  { %3750 = vmatpush3.msra.mxu0 %v76_v5  ;;  %v35_v30 = vld [vmem:[%s5708_s0 + $0xc0] sm:$0xff]  ;;  %v36_v31 = vld [vmem:[%s5708_s0 + $0xc8] sm:$0xff]  ;;  %v37_v32 = vld [vmem:[%s5708_s0 + $0xd0] sm:$0xff] }
   0xc   :  { %3751 = vmatprep.subr.mxu0 %v75_v6  ;;  %v38_v33 = vld [vmem:[%s5708_s0 + $0xd8] sm:$0xff]  ;;  %v39_v34 = vld [vmem:[%s5708_s0 + $0xe0] sm:$0xff]  ;;  %v40_v35 = vld [vmem:[%s5708_s0 + $0xe8] sm:$0xff] }
   0xd   :  { %3752 = vmatpush3.msra.mxu0 %v75_v6  ;;  %v41_v36 = vld [vmem:[%s5708_s0 + $0xf0] sm:$0xff]  ;;  %v42_v37 = vld [vmem:[%s5708_s0 + $0xf8] sm:$0xff]  ;;  %v43_v38 = vld [vmem:[%s5708_s0 + $0x100] sm:$0xff] }
   0xe   :  { %3754 = vmatmul.mubr.msk.f32.vlgmr.msra.gmra.mxu0 %vm86_vm1, %v12_v7  ;;  %v44_v39 = vld [vmem:[%s5708_s0 + $0x108] sm:$0xff]  ;;  %v45_v40 = vld [vmem:[%s5708_s0 + $0x110] sm:$0xff]  ;;  %v46_v41 = vld [vmem:[%s5708_s0 + $0x118] sm:$0xff] }
   0xf   :  { %3756 = vmatprep.mubr.msk.f32.mxu0 %vm86_vm1, %v13_v8  ;;  %v47_v42 = vld [vmem:[%s5708_s0 + $0x120] sm:$0xff]  ;;  %v48_v43 = vld [vmem:[%s5708_s0 + $0x128] sm:$0xff]  ;;  %v49_v44 = vld [vmem:[%s5708_s0 + $0x130] sm:$0xff] }
  0x10   :  { %v50_v45 = vld [vmem:[%s5708_s0 + $0x138] sm:$0xff]  ;;  %v51_v46 = vld [vmem:[%s5708_s0 + $0x140] sm:$0xff]  ;;  %v52_v47 = vld [vmem:[%s5708_s0 + $0x148] sm:$0xff] }
  0x11   :  { %v53_v48 = vld [vmem:[%s5708_s0 + $0x150] sm:$0xff]  ;;  %v54_v49 = vld [vmem:[%s5708_s0 + $0x158] sm:$0xff]  ;;  %v55_v50 = vld [vmem:[%s5708_s0 + $0x160] sm:$0xff] }
  0x12   :  { %3757 = vmatmul.mubr.msk.f32.gmra.mxu0 %vm86_vm1, %v14_v9  ;;  %v56_v51 = vld [vmem:[%s5708_s0 + $0x168] sm:$0xff]  ;;  %v57_v52 = vld [vmem:[%s5708_s0 + $0x170] sm:$0xff]  ;;  %v58_v53 = vld [vmem:[%s5708_s0 + $0x178] sm:$0xff] }
  0x13   :  { %3759 = vmatprep.mubr.msk.f32.mxu0 %vm86_vm1, %v15_v10  ;;  %v59_v54 = vld [vmem:[%s5708_s0 + $0x180] sm:$0xff]  ;;  %v60_v55 = vld [vmem:[%s5708_s0 + $0x188] sm:$0xff]  ;;  %v61_v56 = vld [vmem:[%s5708_s0 + $0x190] sm:$0xff] }
  0x14   :  { %v62_v57 = vld [vmem:[%s5708_s0 + $0x198] sm:$0xff]  ;;  %v63_v58 = vld [vmem:[%s5708_s0 + $0x1a0] sm:$0xff]  ;;  %v64_v59 = vld [vmem:[%s5708_s0 + $0x1a8] sm:$0xff] }
  0x15   :  { %v989_v60 = vld [vmem:[%s5707_s1 + $0x38] sm:$0xff]  ;;  %v65_v61 = vld [vmem:[%s5708_s0 + $0x1b0] sm:$0xff]  ;;  %v67_v0 = vld [vmem:[%s5708_s0 + $0x1c0] sm:$0xff] }
  0x16   :  { %3760 = vmatmul.mubr.msk.f32.gmra.mxu0 %vm86_vm1, %v16_v11  ;;  %3849 = vmatprep.subr.mxu1 %v989_v60  ;;  %v988_v62 = vld [vmem:[%s5707_s1 + $0x30] sm:$0xff]  ;;  %v66_v63 = vld [vmem:[%s5708_s0 + $0x1b8] sm:$0xff]  ;;  %v68_v1 = vld [vmem:[%s5708_s0 + $0x1c8] sm:$0xff] }
  0x17   :  { %3762 = vmatprep.mubr.msk.f32.mxu0 %vm86_vm1, %v17_v12  ;;  %3850 = vmatpush3.msra.mxu1 %v989_v60  ;;  %v69_v2 = vld [vmem:[%s5708_s0 + $0x1d0] sm:$0xff]  ;;  %v70_v3 = vld [vmem:[%s5708_s0 + $0x1d8] sm:$0xff]  ;;  %v71_v4 = vld [vmem:[%s5708_s0 + $0x1e0] sm:$0xff] }
  0x18   :  { %3851 = vmatprep.subr.mxu1 %v988_v62  ;;  %v72_v5 = vld [vmem:[%s5708_s0 + $0x1e8] sm:$0xff]  ;;  %v73_v6 = vld [vmem:[%s5708_s0 + $0x1f0] sm:$0xff]  ;;  %v74_v7 = vld [vmem:[%s5708_s0 + $0x1f8] sm:$0xff] }
  0x19   :  { %3852 = vmatpush3.msra.mxu1 %v988_v62  ;;  %v5144_v8 = vld [vmem:[%s5707_s1 + $0x68] ss:$0 sm:$0xff] }
  0x1a   :  { %3763 = vmatmul.mubr.msk.f32.gmra.mxu0 %vm86_vm1, %v18_v13 }
  0x1b   :  { %3765 = vmatprep.mubr.msk.f32.mxu0 %vm86_vm1, %v19_v14 }
  0x1e   :  { %3766 = vmatmul.mubr.msk.f32.gmra.mxu0 %vm86_vm1, %v20_v15 }
  0x1f   :  { %3768 = vmatprep.mubr.msk.f32.mxu0 %vm86_vm1, %v21_v16 }
  0x22   :  { %3769 = vmatmul.mubr.msk.f32.gmra.mxu0 %vm86_vm1, %v22_v17 }
  0x23   :  { %3771 = vmatprep.mubr.msk.f32.mxu0 %vm86_vm1, %v23_v18 }
  0x26   :  { %3772 = vmatmul.mubr.msk.f32.gmra.mxu0 %vm86_vm1, %v24_v19 }
  0x27   :  { %3774 = vmatprep.mubr.msk.f32.mxu0 %vm86_vm1, %v25_v20 }
  0x2a   :  { %3775 = vmatmul.mubr.msk.f32.gmra.mxu0 %vm86_vm1, %v26_v21 }
  0x2b   :  { %3777 = vmatprep.mubr.msk.f32.mxu0 %vm86_vm1, %v27_v22 }
  0x2e   :  { %3778 = vmatmul.mubr.msk.f32.gmra.mxu0 %vm86_vm1, %v28_v23 }
  0x2f   :  { %3780 = vmatprep.mubr.msk.f32.mxu0 %vm86_vm1, %v29_v24 }
  0x32   :  { %3781 = vmatmul.mubr.msk.f32.gmra.mxu0 %vm86_vm1, %v30_v25 }
  0x33   :  { %3783 = vmatprep.mubr.msk.f32.mxu0 %vm86_vm1, %v31_v26 }
  0x36   :  { %3784 = vmatmul.mubr.msk.f32.gmra.mxu0 %vm86_vm1, %v32_v27 }
  0x37   :  { %3786 = vmatprep.mubr.msk.f32.mxu0 %vm86_vm1, %v33_v28 }
  0x3a   :  { %3787 = vmatmul.mubr.msk.f32.gmra.mxu0 %vm86_vm1, %v34_v29 }
  0x3b   :  { %3789 = vmatprep.mubr.msk.f32.mxu0 %vm86_vm1, %v35_v30 }
  0x3e   :  { %3790 = vmatmul.mubr.msk.f32.gmra.mxu0 %vm86_vm1, %v36_v31 }
  0x3f   :  { %3792 = vmatprep.mubr.msk.f32.mxu0 %vm86_vm1, %v37_v32 }
  0x42   :  { %3793 = vmatmul.mubr.msk.f32.gmra.mxu0 %vm86_vm1, %v38_v33 }
  0x43   :  { %3795 = vmatprep.mubr.msk.f32.mxu0 %vm86_vm1, %v39_v34 }
  0x46   :  { %3796 = vmatmul.mubr.msk.f32.gmra.mxu0 %vm86_vm1, %v40_v35 }
  0x47   :  { %3798 = vmatprep.mubr.msk.f32.mxu0 %vm86_vm1, %v41_v36 }
  0x4a   :  { %3799 = vmatmul.mubr.msk.f32.gmra.mxu0 %vm86_vm1, %v42_v37 }
  0x4b   :  { %3801 = vmatprep.mubr.msk.f32.mxu0 %vm86_vm1, %v43_v38 }
  0x4e   :  { %3802 = vmatmul.mubr.msk.f32.gmra.mxu0 %vm86_vm1, %v44_v39 }
  0x4f   :  { %3804 = vmatprep.mubr.msk.f32.mxu0 %vm86_vm1, %v45_v40 }
  0x52   :  { %3805 = vmatmul.mubr.msk.f32.gmra.mxu0 %vm86_vm1, %v46_v41 }
  0x53   :  { %3807 = vmatprep.mubr.msk.f32.mxu0 %vm86_vm1, %v47_v42 }
  0x56   :  { %3808 = vmatmul.mubr.msk.f32.gmra.mxu0 %vm86_vm1, %v48_v43 }
  0x57   :  { %3810 = vmatprep.mubr.msk.f32.mxu0 %vm86_vm1, %v49_v44 }
  0x5a   :  { %3811 = vmatmul.mubr.msk.f32.gmra.mxu0 %vm86_vm1, %v50_v45 }
  0x5b   :  { %3813 = vmatprep.mubr.msk.f32.mxu0 %vm86_vm1, %v51_v46 }
  0x5e   :  { %3814 = vmatmul.mubr.msk.f32.gmra.mxu0 %vm86_vm1, %v52_v47 }
  0x5f   :  { %3816 = vmatprep.mubr.msk.f32.mxu0 %vm86_vm1, %v53_v48 }
  0x62   :  { %3817 = vmatmul.mubr.msk.f32.gmra.mxu0 %vm86_vm1, %v54_v49 }
  0x63   :  { %3819 = vmatprep.mubr.msk.f32.mxu0 %vm86_vm1, %v55_v50 }
  0x66   :  { %3820 = vmatmul.mubr.msk.f32.gmra.mxu0 %vm86_vm1, %v56_v51 }
  0x67   :  { %3822 = vmatprep.mubr.msk.f32.mxu0 %vm86_vm1, %v57_v52 }
  0x6a   :  { %3823 = vmatmul.mubr.msk.f32.gmra.mxu0 %vm86_vm1, %v58_v53 }
  0x6b   :  { %3825 = vmatprep.mubr.msk.f32.mxu0 %vm86_vm1, %v59_v54 }
  0x6e   :  { %3826 = vmatmul.mubr.msk.f32.gmra.mxu0 %vm86_vm1, %v60_v55 }
  0x6f   :  { %3828 = vmatprep.mubr.msk.f32.mxu0 %vm86_vm1, %v61_v56 }
  0x72   :  { %3829 = vmatmul.mubr.msk.f32.gmra.mxu0 %vm86_vm1, %v62_v57 }
  0x73   :  { %3831 = vmatprep.mubr.msk.f32.mxu0 %vm86_vm1, %v63_v58 }
  0x76   :  { %3832 = vmatmul.mubr.msk.f32.gmra.mxu0 %vm86_vm1, %v64_v59 }
  0x77   :  { %3834 = vmatprep.mubr.msk.f32.mxu0 %vm86_vm1, %v65_v61 }
  0x7a   :  { %3835 = vmatmul.mubr.msk.f32.gmra.mxu0 %vm86_vm1, %v66_v63 }
  0x7b   :  { %3837 = vmatprep.mubr.msk.f32.mxu0 %vm86_vm1, %v67_v0 }
  0x7e   :  { %3838 = vmatmul.mubr.msk.f32.gmra.mxu0 %vm86_vm1, %v68_v1 }
  0x7f   :  { %3840 = vmatprep.mubr.msk.f32.mxu0 %vm86_vm1, %v69_v2 }
  0x82   :  { %3841 = vmatmul.mubr.msk.f32.gmra.mxu0 %vm86_vm1, %v70_v3 }
  0x83   :  { %3843 = vmatprep.mubr.msk.f32.mxu0 %vm86_vm1, %v71_v4 }
  0x86   :  { %3844 = vmatmul.mubr.msk.f32.gmra.mxu0 %vm86_vm1, %v72_v5 }
  0x87   :  { %3846 = vmatprep.mubr.msk.f32.mxu0 %vm86_vm1, %v73_v6 }
  0x8a   :  { %3847 = vmatmul.mubr.msk.f32.gmra.mxu0 %vm86_vm1, %v74_v7 }
  0xce   :  { %v3755_v9 = vpop.f32.mrf.mxu0 }
  0xcf   :  { %v355_v10 = vadd.f32 %v3755_v9, %v5144_v8 }
  0xd0   :  { %v349_v11 = vpop.f32.mrf.mxu0 }
  0xd1   :  { %v669_v12 = vsub.f32 0.0, %v355_v10  ;;  %v350_v13 = vadd.f32 %v5144_v8, %v349_v11 }
  0xd2   :  { %v3758_v14 = vpop.f32.mrf.mxu0 }
  0xd3   :  { %v734_v15 = vmul.f32 1.442695, %v669_v12  ;;  %v668_v16 = vsub.f32 0.0, %v350_v13  ;;  %v365_v17 = vadd.f32 %v3758_v14, %v5144_v8 }
  0xd4   :  { %v359_v18 = vpop.f32.mrf.mxu0 }
  0xd5   :  { %4056 = vpow2.f32 %v734_v15  ;;  %v732_v19 = vmul.f32 1.442695, %v668_v16  ;;  %v671_v20 = vsub.f32 0.0, %v365_v17  ;;  %v360_v21 = vadd.f32 %v5144_v8, %v359_v18 }
  0xd6   :  { %v3761_v22 = vpop.f32.mrf.mxu0 }
  0xd7   :  { %4058 = vpow2.f32 %v732_v19  ;;  %v738_v23 = vmul.f32 1.442695, %v671_v20  ;;  %v670_v24 = vsub.f32 0.0, %v360_v21  ;;  %v375_v25 = vadd.f32 %v3761_v22, %v5144_v8 }
  0xd8   :  { %v369_v26 = vpop.f32.mrf.mxu0 }
  0xd9   :  { %4060 = vpow2.f32 %v738_v23  ;;  %v736_v27 = vmul.f32 1.442695, %v670_v24  ;;  %v673_v28 = vsub.f32 0.0, %v375_v25  ;;  %v370_v29 = vadd.f32 %v5144_v8, %v369_v26 }
  0xda   :  { %v3764_v30 = vpop.f32.mrf.mxu0 }
  0xdb   :  { %4062 = vpow2.f32 %v736_v27  ;;  %v742_v31 = vmul.f32 1.442695, %v673_v28  ;;  %v672_v32 = vsub.f32 0.0, %v370_v29  ;;  %v385_v33 = vadd.f32 %v3764_v30, %v5144_v8 }
  0xdc   :  { %v379_v34 = vpop.f32.mrf.mxu0 }
  0xdd   :  { %4064 = vpow2.f32 %v742_v31  ;;  %v740_v35 = vmul.f32 1.442695, %v672_v32  ;;  %v675_v36 = vsub.f32 0.0, %v385_v33  ;;  %v380_v37 = vadd.f32 %v5144_v8, %v379_v34 }
  0xde   :  { %v3767_v38 = vpop.f32.mrf.mxu0 }
  0xdf   :  { %4066 = vpow2.f32 %v740_v35  ;;  %v746_v39 = vmul.f32 1.442695, %v675_v36  ;;  %v674_v40 = vsub.f32 0.0, %v380_v37  ;;  %v395_v41 = vadd.f32 %v3767_v38, %v5144_v8 }
  0xe0   :  { %v389_v42 = vpop.f32.mrf.mxu0 }
  0xe1   :  { %4068 = vpow2.f32 %v746_v39  ;;  %v744_v43 = vmul.f32 1.442695, %v674_v40  ;;  %v677_v44 = vsub.f32 0.0, %v395_v41  ;;  %v390_v45 = vadd.f32 %v5144_v8, %v389_v42  ;;  %v1896_v40 = vld [vmem:[%s5707_s1 + $0x58] sm:$0xff] }
  0xe2   :  { %v4057_v46 = vpop.eup %4056  ;;  %v3770_v47 = vpop.f32.mrf.mxu0  ;;  %3949 = vmatprep.subr.mxu1 %v1896_v40 }
  0xe3   :  { %v861_v48 = vadd.f32 1.0, %v4057_v46  ;;  %4070 = vpow2.f32 %v744_v43  ;;  %v750_v49 = vmul.f32 1.442695, %v677_v44  ;;  %v676_v50 = vsub.f32 0.0, %v390_v45 }
  0xe4   :  { %v4059_v51 = vpop.eup %4058  ;;  %v405_v52 = vadd.f32 %v3770_v47, %v5144_v8  ;;  %v399_v53 = vpop.f32.mrf.mxu0 }
  0xe5   :  { %4072 = vrcp.f32 %v861_v48  ;;  %v860_v54 = vadd.f32 1.0, %v4059_v51  ;;  %v748_v55 = vmul.f32 1.442695, %v676_v50  ;;  %v400_v56 = vadd.f32 %v5144_v8, %v399_v53 }
  0xe6   :  { %v4061_v57 = vpop.eup %4060  ;;  %4074 = vpow2.f32 %v750_v49  ;;  %v679_v58 = vsub.f32 0.0, %v405_v52  ;;  %v3773_v59 = vpop.f32.mrf.mxu0 }
  0xe7   :  { %4076 = vrcp.f32 %v860_v54  ;;  %v863_v60 = vadd.f32 1.0, %v4061_v57  ;;  %v678_v61 = vsub.f32 0.0, %v400_v56  ;;  %v415_v62 = vadd.f32 %v3773_v59, %v5144_v8 }
  0xe8   :  { %v4063_v63 = vpop.eup %4062  ;;  %4078 = vpow2.f32 %v748_v55  ;;  %v754_v0 = vmul.f32 1.442695, %v679_v58  ;;  %v409_v1 = vpop.f32.mrf.mxu0 }
  0xe9   :  { %4080 = vrcp.f32 %v863_v60  ;;  %v862_v2 = vadd.f32 1.0, %v4063_v63  ;;  %v752_v3 = vmul.f32 1.442695, %v678_v61  ;;  %v681_v4 = vsub.f32 0.0, %v415_v62 }
  0xea   :  { %v4065_v5 = vpop.eup %4064  ;;  %4082 = vpow2.f32 %v754_v0  ;;  %v410_v6 = vadd.f32 %v5144_v8, %v409_v1  ;;  %v3776_v7 = vpop.f32.mrf.mxu0 }
  0xeb   :  { %4084 = vrcp.f32 %v862_v2  ;;  %v865_v9 = vadd.f32 1.0, %v4065_v5  ;;  %v758_v10 = vmul.f32 1.442695, %v681_v4  ;;  %v425_v11 = vadd.f32 %v3776_v7, %v5144_v8 }
  0xec   :  { %v4067_v12 = vpop.eup %4066  ;;  %4086 = vpow2.f32 %v752_v3  ;;  %v680_v13 = vsub.f32 0.0, %v410_v6  ;;  %v419_v14 = vpop.f32.mrf.mxu0 }
  0xed   :  { %4088 = vrcp.f32 %v865_v9  ;;  %v864_v15 = vadd.f32 1.0, %v4067_v12  ;;  %v683_v16 = vsub.f32 0.0, %v425_v11  ;;  %v420_v17 = vadd.f32 %v5144_v8, %v419_v14 }
  0xee   :  { %v4069_v18 = vpop.eup %4068  ;;  %4090 = vpow2.f32 %v758_v10  ;;  %v756_v19 = vmul.f32 1.442695, %v680_v13  ;;  %v3779_v20 = vpop.f32.mrf.mxu0 }
  0xef   :  { %4092 = vrcp.f32 %v864_v15  ;;  %v867_v21 = vadd.f32 1.0, %v4069_v18  ;;  %v762_v22 = vmul.f32 1.442695, %v683_v16  ;;  %v682_v23 = vsub.f32 0.0, %v420_v17 }
  0xf0   :  { %v4071_v24 = vpop.eup %4070  ;;  %4094 = vpow2.f32 %v756_v19  ;;  %v435_v25 = vadd.f32 %v3779_v20, %v5144_v8  ;;  %v429_v26 = vpop.f32.mrf.mxu0 }
  0xf1   :  { %4096 = vrcp.f32 %v867_v21  ;;  %v866_v27 = vadd.f32 1.0, %v4071_v24  ;;  %v760_v28 = vmul.f32 1.442695, %v682_v23  ;;  %v430_v29 = vadd.f32 %v5144_v8, %v429_v26 }
  0xf2   :  { %v4073_v30 = vpop.eup %4072  ;;  %4098 = vpow2.f32 %v762_v22  ;;  %v685_v31 = vsub.f32 0.0, %v435_v25  ;;  %v3782_v32 = vpop.f32.mrf.mxu0 }
  0xf3   :  { %v4075_v33 = vpop.eup %4074  ;;  %4100 = vrcp.f32 %v866_v27  ;;  %v684_v34 = vsub.f32 0.0, %v430_v29  ;;  %v445_v35 = vadd.f32 %v3782_v32, %v5144_v8 }
  0xf4   :  { %v4077_v36 = vpop.eup %4076  ;;  %v869_v37 = vadd.f32 1.0, %v4075_v33  ;;  %4102 = vpow2.f32 %v760_v28  ;;  %v766_v38 = vmul.f32 1.442695, %v685_v31  ;;  %v439_v39 = vpop.f32.mrf.mxu0 }
  0xf5   :  { %v4079_v41 = vpop.eup %4078  ;;  %v764_v42 = vmul.f32 1.442695, %v684_v34  ;;  %v687_v43 = vsub.f32 0.0, %v445_v35  ;;  %v440_v44 = vadd.f32 %v5144_v8, %v439_v39  ;;  %3853 = vmatprep.mubr.msk.f32.mxu1 %vm995_vm2, %v4077_v36 }
  0xf6   :  { %v4081_v45 = vpop.eup %4080  ;;  %4104 = vrcp.f32 %v869_v37  ;;  %v868_v46 = vadd.f32 1.0, %v4079_v41  ;;  %v3785_v47 = vpop.f32.mrf.mxu0  ;;  %3854 = vmatmul.mubr.msk.f32.vlgmr.msra.gmra.mxu1 %vm995_vm2, %v4073_v30 }
  0xf7   :  { %v4083_v48 = vpop.eup %4082  ;;  %4106 = vpow2.f32 %v766_v38  ;;  %v770_v49 = vmul.f32 1.442695, %v687_v43  ;;  %v686_v50 = vsub.f32 0.0, %v440_v44  ;;  %v455_v51 = vadd.f32 %v3785_v47, %v5144_v8  ;;  %3950 = vmatpush3.msra.mxu1 %v1896_v40 }
  0xf8   :  { %v4085_v52 = vpop.eup %4084  ;;  %4108 = vrcp.f32 %v868_v46  ;;  %v871_v53 = vadd.f32 1.0, %v4083_v48  ;;  %v449_v54 = vpop.f32.mrf.mxu0 }
  0xf9   :  { %v4087_v55 = vpop.eup %4086  ;;  %4110 = vpow2.f32 %v764_v42  ;;  %v768_v56 = vmul.f32 1.442695, %v686_v50  ;;  %v689_v57 = vsub.f32 0.0, %v455_v51  ;;  %v450_v58 = vadd.f32 %v5144_v8, %v449_v54  ;;  %3856 = vmatprep.mubr.msk.f32.mxu1 %vm995_vm2, %v4085_v52 }
  0xfa   :  { %v4089_v59 = vpop.eup %4088  ;;  %4112 = vrcp.f32 %v871_v53  ;;  %v870_v60 = vadd.f32 1.0, %v4087_v55  ;;  %v3788_v61 = vpop.f32.mrf.mxu0  ;;  %3857 = vmatmul.mubr.msk.f32.gmra.mxu1 %vm995_vm2, %v4081_v45 }
  0xfb   :  { %v4091_v62 = vpop.eup %4090  ;;  %4114 = vpow2.f32 %v770_v49  ;;  %v774_v63 = vmul.f32 1.442695, %v689_v57  ;;  %v688_v0 = vsub.f32 0.0, %v450_v58  ;;  %v465_v1 = vadd.f32 %v3788_v61, %v5144_v8 }
  0xfc   :  { %v4093_v2 = vpop.eup %4092  ;;  %4116 = vrcp.f32 %v870_v60  ;;  %v873_v3 = vadd.f32 1.0, %v4091_v62  ;;  %v459_v4 = vpop.f32.mrf.mxu0 }
  0xfd   :  { %v4095_v5 = vpop.eup %4094  ;;  %4118 = vpow2.f32 %v768_v56  ;;  %v772_v6 = vmul.f32 1.442695, %v688_v0  ;;  %v691_v7 = vsub.f32 0.0, %v465_v1  ;;  %v460_v9 = vadd.f32 %v5144_v8, %v459_v4  ;;  %3859 = vmatprep.mubr.msk.f32.mxu1 %vm995_vm2, %v4093_v2 }
  0xfe   :  { %v4097_v10 = vpop.eup %4096  ;;  %4120 = vrcp.f32 %v873_v3  ;;  %v872_v11 = vadd.f32 1.0, %v4095_v5  ;;  %v3791_v12 = vpop.f32.mrf.mxu0  ;;  %3860 = vmatmul.mubr.msk.f32.gmra.mxu1 %vm995_vm2, %v4089_v59 }
  0xff   :  { %v4099_v13 = vpop.eup %4098  ;;  %4122 = vpow2.f32 %v774_v63  ;;  %v778_v14 = vmul.f32 1.442695, %v691_v7  ;;  %v690_v15 = vsub.f32 0.0, %v460_v9  ;;  %v475_v16 = vadd.f32 %v3791_v12, %v5144_v8 }
 0x100   :  { %v4101_v17 = vpop.eup %4100  ;;  %4124 = vrcp.f32 %v872_v11  ;;  %v875_v18 = vadd.f32 1.0, %v4099_v13  ;;  %v469_v19 = vpop.f32.mrf.mxu0 }
 0x101   :  { %v4103_v20 = vpop.eup %4102  ;;  %4126 = vpow2.f32 %v772_v6  ;;  %v776_v21 = vmul.f32 1.442695, %v690_v15  ;;  %v693_v22 = vsub.f32 0.0, %v475_v16  ;;  %v470_v23 = vadd.f32 %v5144_v8, %v469_v19  ;;  %3862 = vmatprep.mubr.msk.f32.mxu1 %vm995_vm2, %v4101_v17 }
 0x102   :  { %4128 = vrcp.f32 %v875_v18  ;;  %v874_v24 = vadd.f32 1.0, %v4103_v20  ;;  %v3794_v25 = vpop.f32.mrf.mxu0  ;;  %3863 = vmatmul.mubr.msk.f32.gmra.mxu1 %vm995_vm2, %v4097_v10 }
 0x103   :  { %v4105_v26 = vpop.eup %4104  ;;  %4130 = vpow2.f32 %v778_v14  ;;  %v782_v27 = vmul.f32 1.442695, %v693_v22  ;;  %v692_v28 = vsub.f32 0.0, %v470_v23  ;;  %v485_v29 = vadd.f32 %v3794_v25, %v5144_v8 }
 0x104   :  { %v4107_v30 = vpop.eup %4106  ;;  %4132 = vrcp.f32 %v874_v24  ;;  %v479_v31 = vpop.f32.mrf.mxu0 }
 0x105   :  { %v4109_v32 = vpop.eup %4108  ;;  %v877_v33 = vadd.f32 1.0, %v4107_v30  ;;  %4134 = vpow2.f32 %v776_v21  ;;  %v780_v34 = vmul.f32 1.442695, %v692_v28  ;;  %v695_v35 = vsub.f32 0.0, %v485_v29 }
 0x106   :  { %v4111_v36 = vpop.eup %4110  ;;  %4136 = vpow2.f32 %v782_v27  ;;  %v480_v37 = vadd.f32 %v5144_v8, %v479_v31  ;;  %3865 = vmatprep.mubr.msk.f32.mxu1 %vm995_vm2, %v4109_v32  ;;  %v3797_v38 = vpop.f32.mrf.mxu0 }
 0x107   :  { %v4113_v39 = vpop.eup %4112  ;;  %4138 = vrcp.f32 %v877_v33  ;;  %v876_v40 = vadd.f32 1.0, %v4111_v36  ;;  %v786_v41 = vmul.f32 1.442695, %v695_v35  ;;  %v495_v42 = vadd.f32 %v3797_v38, %v5144_v8  ;;  %3866 = vmatmul.mubr.msk.f32.gmra.mxu1 %vm995_vm2, %v4105_v26 }
 0x108   :  { %v4115_v43 = vpop.eup %4114  ;;  %4140 = vpow2.f32 %v780_v34  ;;  %v694_v44 = vsub.f32 0.0, %v480_v37  ;;  %v489_v45 = vpop.f32.mrf.mxu0 }
 0x109   :  { %v4117_v46 = vpop.eup %4116  ;;  %4142 = vrcp.f32 %v876_v40  ;;  %v879_v47 = vadd.f32 1.0, %v4115_v43  ;;  %v697_v48 = vsub.f32 0.0, %v495_v42  ;;  %v490_v49 = vadd.f32 %v5144_v8, %v489_v45 }
 0x10a   :  { %v4119_v50 = vpop.eup %4118  ;;  %4144 = vpow2.f32 %v786_v41  ;;  %v784_v51 = vmul.f32 1.442695, %v694_v44  ;;  %3868 = vmatprep.mubr.msk.f32.mxu1 %vm995_vm2, %v4117_v46  ;;  %v3800_v52 = vpop.f32.mrf.mxu0 }
 0x10b   :  { %v4121_v53 = vpop.eup %4120  ;;  %4146 = vrcp.f32 %v879_v47  ;;  %v878_v54 = vadd.f32 1.0, %v4119_v50  ;;  %v790_v55 = vmul.f32 1.442695, %v697_v48  ;;  %v696_v56 = vsub.f32 0.0, %v490_v49  ;;  %3869 = vmatmul.mubr.msk.f32.gmra.mxu1 %vm995_vm2, %v4113_v39 }
 0x10c   :  { %v4123_v57 = vpop.eup %4122  ;;  %4148 = vpow2.f32 %v784_v51  ;;  %v505_v58 = vadd.f32 %v3800_v52, %v5144_v8  ;;  %v499_v59 = vpop.f32.mrf.mxu0 }
 0x10d   :  { %v4125_v60 = vpop.eup %4124  ;;  %4150 = vrcp.f32 %v878_v54  ;;  %v881_v61 = vadd.f32 1.0, %v4123_v57  ;;  %v788_v62 = vmul.f32 1.442695, %v696_v56  ;;  %v500_v63 = vadd.f32 %v5144_v8, %v499_v59 }
 0x10e   :  { %v4127_v0 = vpop.eup %4126  ;;  %4152 = vpow2.f32 %v790_v55  ;;  %v699_v1 = vsub.f32 0.0, %v505_v58  ;;  %3871 = vmatprep.mubr.msk.f32.mxu1 %vm995_vm2, %v4125_v60  ;;  %v3803_v2 = vpop.f32.mrf.mxu0 }
 0x10f   :  { %v4129_v3 = vpop.eup %4128  ;;  %4154 = vrcp.f32 %v881_v61  ;;  %v880_v4 = vadd.f32 1.0, %v4127_v0  ;;  %v698_v5 = vsub.f32 0.0, %v500_v63  ;;  %v515_v6 = vadd.f32 %v3803_v2, %v5144_v8  ;;  %3872 = vmatmul.mubr.msk.f32.gmra.mxu1 %vm995_vm2, %v4121_v53 }
 0x110   :  { %v4131_v7 = vpop.eup %4130  ;;  %4156 = vpow2.f32 %v788_v62  ;;  %v794_v9 = vmul.f32 1.442695, %v699_v1  ;;  %v509_v10 = vpop.f32.mrf.mxu0 }
 0x111   :  { %v4133_v11 = vpop.eup %4132  ;;  %4158 = vrcp.f32 %v880_v4  ;;  %v883_v12 = vadd.f32 1.0, %v4131_v7  ;;  %v792_v13 = vmul.f32 1.442695, %v698_v5  ;;  %v701_v14 = vsub.f32 0.0, %v515_v6 }
 0x112   :  { %v4135_v15 = vpop.eup %4134  ;;  %4160 = vpow2.f32 %v794_v9  ;;  %v510_v16 = vadd.f32 %v5144_v8, %v509_v10  ;;  %3874 = vmatprep.mubr.msk.f32.mxu1 %vm995_vm2, %v4133_v11  ;;  %v3806_v17 = vpop.f32.mrf.mxu0 }
 0x113   :  { %v4137_v18 = vpop.eup %4136  ;;  %4162 = vrcp.f32 %v883_v12  ;;  %v882_v19 = vadd.f32 1.0, %v4135_v15  ;;  %v798_v20 = vmul.f32 1.442695, %v701_v14  ;;  %v525_v21 = vadd.f32 %v3806_v17, %v5144_v8  ;;  %3875 = vmatmul.mubr.msk.f32.gmra.mxu1 %vm995_vm2, %v4129_v3 }
 0x114   :  { %v4139_v22 = vpop.eup %4138  ;;  %v885_v23 = vadd.f32 1.0, %v4137_v18  ;;  %4164 = vpow2.f32 %v792_v13  ;;  %v700_v24 = vsub.f32 0.0, %v510_v16  ;;  %v519_v25 = vpop.f32.mrf.mxu0 }
 0x115   :  { %v4141_v26 = vpop.eup %4140  ;;  %4166 = vrcp.f32 %v882_v19  ;;  %v703_v27 = vsub.f32 0.0, %v525_v21  ;;  %v520_v28 = vadd.f32 %v5144_v8, %v519_v25 }
 0x116   :  { %v4143_v29 = vpop.eup %4142  ;;  %4168 = vrcp.f32 %v885_v23  ;;  %v884_v30 = vadd.f32 1.0, %v4141_v26  ;;  %v796_v31 = vmul.f32 1.442695, %v700_v24  ;;  %v3809_v32 = vpop.f32.mrf.mxu0 }
 0x117   :  { %v4145_v33 = vpop.eup %4144  ;;  %4170 = vpow2.f32 %v798_v20  ;;  %v802_v34 = vmul.f32 1.442695, %v703_v27  ;;  %v702_v35 = vsub.f32 0.0, %v520_v28  ;;  %3877 = vmatprep.mubr.msk.f32.mxu1 %vm995_vm2, %v4143_v29  ;;  %v535_v36 = vadd.f32 %v3809_v32, %v5144_v8 }
 0x118   :  { %v4147_v37 = vpop.eup %4146  ;;  %4172 = vrcp.f32 %v884_v30  ;;  %v887_v38 = vadd.f32 1.0, %v4145_v33  ;;  %3878 = vmatmul.mubr.msk.f32.gmra.mxu1 %vm995_vm2, %v4139_v22  ;;  %v529_v39 = vpop.f32.mrf.mxu0 }
 0x119   :  { %v4149_v40 = vpop.eup %4148  ;;  %4174 = vpow2.f32 %v796_v31  ;;  %v800_v41 = vmul.f32 1.442695, %v702_v35  ;;  %v705_v42 = vsub.f32 0.0, %v535_v36  ;;  %v530_v43 = vadd.f32 %v5144_v8, %v529_v39 }
 0x11a   :  { %v4151_v44 = vpop.eup %4150  ;;  %4176 = vrcp.f32 %v887_v38  ;;  %v886_v45 = vadd.f32 1.0, %v4149_v40  ;;  %v3812_v46 = vpop.f32.mrf.mxu0 }
 0x11b   :  { %v4153_v47 = vpop.eup %4152  ;;  %4178 = vpow2.f32 %v802_v34  ;;  %v806_v48 = vmul.f32 1.442695, %v705_v42  ;;  %v704_v49 = vsub.f32 0.0, %v530_v43  ;;  %3880 = vmatprep.mubr.msk.f32.mxu1 %vm995_vm2, %v4151_v44  ;;  %v545_v50 = vadd.f32 %v3812_v46, %v5144_v8 }
 0x11c   :  { %v4155_v51 = vpop.eup %4154  ;;  %4180 = vrcp.f32 %v886_v45  ;;  %v889_v52 = vadd.f32 1.0, %v4153_v47  ;;  %3881 = vmatmul.mubr.msk.f32.gmra.mxu1 %vm995_vm2, %v4147_v37  ;;  %v539_v53 = vpop.f32.mrf.mxu0 }
 0x11d   :  { %v4157_v54 = vpop.eup %4156  ;;  %4182 = vpow2.f32 %v800_v41  ;;  %v804_v55 = vmul.f32 1.442695, %v704_v49  ;;  %v707_v56 = vsub.f32 0.0, %v545_v50  ;;  %v540_v57 = vadd.f32 %v5144_v8, %v539_v53 }
 0x11e   :  { %v4159_v58 = vpop.eup %4158  ;;  %4184 = vrcp.f32 %v889_v52  ;;  %v888_v59 = vadd.f32 1.0, %v4157_v54  ;;  %v3815_v60 = vpop.f32.mrf.mxu0 }
 0x11f   :  { %v4161_v61 = vpop.eup %4160  ;;  %4186 = vpow2.f32 %v806_v48  ;;  %v810_v62 = vmul.f32 1.442695, %v707_v56  ;;  %v706_v63 = vsub.f32 0.0, %v540_v57  ;;  %3883 = vmatprep.mubr.msk.f32.mxu1 %vm995_vm2, %v4159_v58  ;;  %v555_v0 = vadd.f32 %v3815_v60, %v5144_v8 }
 0x120   :  { %v4163_v1 = vpop.eup %4162  ;;  %4188 = vrcp.f32 %v888_v59  ;;  %v891_v2 = vadd.f32 1.0, %v4161_v61  ;;  %3884 = vmatmul.mubr.msk.f32.gmra.mxu1 %vm995_vm2, %v4155_v51  ;;  %v549_v3 = vpop.f32.mrf.mxu0 }
 0x121   :  { %v4165_v4 = vpop.eup %4164  ;;  %4190 = vpow2.f32 %v804_v55  ;;  %v808_v5 = vmul.f32 1.442695, %v706_v63  ;;  %v709_v6 = vsub.f32 0.0, %v555_v0  ;;  %v550_v7 = vadd.f32 %v5144_v8, %v549_v3 }
 0x122   :  { %v4167_v9 = vpop.eup %4166  ;;  %4192 = vrcp.f32 %v891_v2  ;;  %v890_v10 = vadd.f32 1.0, %v4165_v4  ;;  %v3818_v11 = vpop.f32.mrf.mxu0 }
 0x123   :  { %v4169_v12 = vpop.eup %4168  ;;  %4194 = vpow2.f32 %v810_v62  ;;  %v814_v13 = vmul.f32 1.442695, %v709_v6  ;;  %v708_v14 = vsub.f32 0.0, %v550_v7  ;;  %3886 = vmatprep.mubr.msk.f32.mxu1 %vm995_vm2, %v4167_v9  ;;  %v565_v15 = vadd.f32 %v3818_v11, %v5144_v8 }
 0x124   :  { %v4171_v16 = vpop.eup %4170  ;;  %4196 = vrcp.f32 %v890_v10  ;;  %3887 = vmatmul.mubr.msk.f32.gmra.mxu1 %vm995_vm2, %v4163_v1  ;;  %v559_v17 = vpop.f32.mrf.mxu0 }
 0x125   :  { %v4173_v18 = vpop.eup %4172  ;;  %v893_v19 = vadd.f32 1.0, %v4171_v16  ;;  %4198 = vpow2.f32 %v808_v5  ;;  %v812_v20 = vmul.f32 1.442695, %v708_v14  ;;  %v711_v21 = vsub.f32 0.0, %v565_v15 }
 0x126   :  { %v4175_v22 = vpop.eup %4174  ;;  %4200 = vpow2.f32 %v814_v13  ;;  %v560_v23 = vadd.f32 %v5144_v8, %v559_v17  ;;  %3889 = vmatprep.mubr.msk.f32.mxu1 %vm995_vm2, %v4173_v18  ;;  %v3821_v24 = vpop.f32.mrf.mxu0 }
 0x127   :  { %v4177_v25 = vpop.eup %4176  ;;  %4202 = vrcp.f32 %v893_v19  ;;  %v892_v26 = vadd.f32 1.0, %v4175_v22  ;;  %v818_v27 = vmul.f32 1.442695, %v711_v21  ;;  %v575_v28 = vadd.f32 %v3821_v24, %v5144_v8 }
 0x128   :  { %v4179_v29 = vpop.eup %4178  ;;  %4204 = vpow2.f32 %v812_v20  ;;  %v710_v30 = vsub.f32 0.0, %v560_v23  ;;  %3890 = vmatmul.mubr.msk.f32.gmra.mxu1 %vm995_vm2, %v4169_v12  ;;  %v569_v31 = vpop.f32.mrf.mxu0 }
 0x129   :  { %v4181_v32 = vpop.eup %4180  ;;  %4206 = vrcp.f32 %v892_v26  ;;  %v895_v33 = vadd.f32 1.0, %v4179_v29  ;;  %v713_v34 = vsub.f32 0.0, %v575_v28  ;;  %v570_v35 = vadd.f32 %v5144_v8, %v569_v31 }
 0x12a   :  { %v4183_v36 = vpop.eup %4182  ;;  %4208 = vpow2.f32 %v818_v27  ;;  %v816_v37 = vmul.f32 1.442695, %v710_v30  ;;  %3892 = vmatprep.mubr.msk.f32.mxu1 %vm995_vm2, %v4181_v32  ;;  %v3824_v38 = vpop.f32.mrf.mxu0 }
 0x12b   :  { %v4185_v39 = vpop.eup %4184  ;;  %4210 = vrcp.f32 %v895_v33  ;;  %v894_v40 = vadd.f32 1.0, %v4183_v36  ;;  %v822_v41 = vmul.f32 1.442695, %v713_v34  ;;  %v712_v42 = vsub.f32 0.0, %v570_v35 }
 0x12c   :  { %v4187_v43 = vpop.eup %4186  ;;  %4212 = vpow2.f32 %v816_v37  ;;  %v585_v44 = vadd.f32 %v3824_v38, %v5144_v8  ;;  %3893 = vmatmul.mubr.msk.f32.gmra.mxu1 %vm995_vm2, %v4177_v25  ;;  %v579_v45 = vpop.f32.mrf.mxu0 }
 0x12d   :  { %v4189_v46 = vpop.eup %4188  ;;  %4214 = vrcp.f32 %v894_v40  ;;  %v897_v47 = vadd.f32 1.0, %v4187_v43  ;;  %v820_v48 = vmul.f32 1.442695, %v712_v42  ;;  %v580_v49 = vadd.f32 %v5144_v8, %v579_v45 }
 0x12e   :  { %v4191_v50 = vpop.eup %4190  ;;  %4216 = vpow2.f32 %v822_v41  ;;  %v715_v51 = vsub.f32 0.0, %v585_v44  ;;  %3895 = vmatprep.mubr.msk.f32.mxu1 %vm995_vm2, %v4189_v46  ;;  %v3827_v52 = vpop.f32.mrf.mxu0 }
 0x12f   :  { %v4193_v53 = vpop.eup %4192  ;;  %4218 = vrcp.f32 %v897_v47  ;;  %v896_v54 = vadd.f32 1.0, %v4191_v50  ;;  %v714_v55 = vsub.f32 0.0, %v580_v49  ;;  %v595_v56 = vadd.f32 %v3827_v52, %v5144_v8 }
 0x130   :  { %v4195_v57 = vpop.eup %4194  ;;  %4220 = vpow2.f32 %v820_v48  ;;  %v826_v58 = vmul.f32 1.442695, %v715_v51  ;;  %3896 = vmatmul.mubr.msk.f32.gmra.mxu1 %vm995_vm2, %v4185_v39  ;;  %v589_v59 = vpop.f32.mrf.mxu0 }
 0x131   :  { %v4197_v60 = vpop.eup %4196  ;;  %4222 = vrcp.f32 %v896_v54  ;;  %v899_v61 = vadd.f32 1.0, %v4195_v57  ;;  %v824_v62 = vmul.f32 1.442695, %v714_v55  ;;  %v717_v63 = vsub.f32 0.0, %v595_v56 }
 0x132   :  { %v4199_v0 = vpop.eup %4198  ;;  %4224 = vpow2.f32 %v826_v58  ;;  %v590_v1 = vadd.f32 %v5144_v8, %v589_v59  ;;  %3898 = vmatprep.mubr.msk.f32.mxu1 %vm995_vm2, %v4197_v60  ;;  %v3830_v2 = vpop.f32.mrf.mxu0 }
 0x133   :  { %v4201_v3 = vpop.eup %4200  ;;  %4226 = vrcp.f32 %v899_v61  ;;  %v898_v4 = vadd.f32 1.0, %v4199_v0  ;;  %v830_v5 = vmul.f32 1.442695, %v717_v63  ;;  %v605_v6 = vadd.f32 %v3830_v2, %v5144_v8  ;;  %v4840_v0 = vld [vmem:[%s5707_s1 + $0x68] ss:$0 sm:$0xff] }
 0x134   :  { %v4203_v7 = vpop.eup %4202  ;;  %v901_v9 = vadd.f32 1.0, %v4201_v3  ;;  %4228 = vpow2.f32 %v824_v62  ;;  %v716_v10 = vsub.f32 0.0, %v590_v1  ;;  %3899 = vmatmul.mubr.msk.f32.gmra.mxu1 %vm995_vm2, %v4193_v53  ;;  %v599_v11 = vpop.f32.mrf.mxu0 }
 0x135   :  { %v4205_v12 = vpop.eup %4204  ;;  %4230 = vrcp.f32 %v898_v4  ;;  %v719_v13 = vsub.f32 0.0, %v605_v6  ;;  %v600_v14 = vadd.f32 %v5144_v8, %v599_v11 }
 0x136   :  { %v4207_v15 = vpop.eup %4206  ;;  %4232 = vrcp.f32 %v901_v9  ;;  %v900_v16 = vadd.f32 1.0, %v4205_v12  ;;  %v828_v17 = vmul.f32 1.442695, %v716_v10  ;;  %v3833_v18 = vpop.f32.mrf.mxu0 }
 0x137   :  { %v4209_v19 = vpop.eup %4208  ;;  %4234 = vpow2.f32 %v830_v5  ;;  %v834_v20 = vmul.f32 1.442695, %v719_v13  ;;  %v718_v21 = vsub.f32 0.0, %v600_v14  ;;  %3901 = vmatprep.mubr.msk.f32.mxu1 %vm995_vm2, %v4207_v15  ;;  %v615_v22 = vadd.f32 %v3833_v18, %v5144_v8 }
 0x138   :  { %v4211_v23 = vpop.eup %4210  ;;  %4236 = vrcp.f32 %v900_v16  ;;  %v903_v24 = vadd.f32 1.0, %v4209_v19  ;;  %3902 = vmatmul.mubr.msk.f32.gmra.mxu1 %vm995_vm2, %v4203_v7  ;;  %v609_v25 = vpop.f32.mrf.mxu0 }
 0x139   :  { %v4213_v26 = vpop.eup %4212  ;;  %4238 = vpow2.f32 %v828_v17  ;;  %v832_v27 = vmul.f32 1.442695, %v718_v21  ;;  %v721_v28 = vsub.f32 0.0, %v615_v22  ;;  %v610_v29 = vadd.f32 %v5144_v8, %v609_v25 }
 0x13a   :  { %v4215_v30 = vpop.eup %4214  ;;  %4240 = vrcp.f32 %v903_v24  ;;  %v902_v31 = vadd.f32 1.0, %v4213_v26  ;;  %v3836_v32 = vpop.f32.mrf.mxu0 }
 0x13b   :  { %v4217_v33 = vpop.eup %4216  ;;  %4242 = vpow2.f32 %v834_v20  ;;  %v838_v34 = vmul.f32 1.442695, %v721_v28  ;;  %v720_v35 = vsub.f32 0.0, %v610_v29  ;;  %3904 = vmatprep.mubr.msk.f32.mxu1 %vm995_vm2, %v4215_v30  ;;  %v625_v36 = vadd.f32 %v3836_v32, %v5144_v8 }
 0x13c   :  { %v4219_v37 = vpop.eup %4218  ;;  %4244 = vrcp.f32 %v902_v31  ;;  %v905_v38 = vadd.f32 1.0, %v4217_v33  ;;  %3905 = vmatmul.mubr.msk.f32.gmra.mxu1 %vm995_vm2, %v4211_v23  ;;  %v619_v39 = vpop.f32.mrf.mxu0 }
 0x13d   :  { %v4221_v40 = vpop.eup %4220  ;;  %4246 = vpow2.f32 %v832_v27  ;;  %v836_v41 = vmul.f32 1.442695, %v720_v35  ;;  %v723_v42 = vsub.f32 0.0, %v625_v36  ;;  %v620_v43 = vadd.f32 %v5144_v8, %v619_v39 }
 0x13e   :  { %v4223_v44 = vpop.eup %4222  ;;  %4248 = vrcp.f32 %v905_v38  ;;  %v904_v45 = vadd.f32 1.0, %v4221_v40  ;;  %v3839_v46 = vpop.f32.mrf.mxu0 }
 0x13f   :  { %v4225_v47 = vpop.eup %4224  ;;  %4250 = vpow2.f32 %v838_v34  ;;  %v842_v48 = vmul.f32 1.442695, %v723_v42  ;;  %v722_v49 = vsub.f32 0.0, %v620_v43  ;;  %3907 = vmatprep.mubr.msk.f32.mxu1 %vm995_vm2, %v4223_v44  ;;  %v635_v50 = vadd.f32 %v3839_v46, %v5144_v8 }
 0x140   :  { %v4227_v51 = vpop.eup %4226  ;;  %4252 = vrcp.f32 %v904_v45  ;;  %v907_v52 = vadd.f32 1.0, %v4225_v47  ;;  %3908 = vmatmul.mubr.msk.f32.gmra.mxu1 %vm995_vm2, %v4219_v37  ;;  %v629_v53 = vpop.f32.mrf.mxu0 }
 0x141   :  { %v4229_v54 = vpop.eup %4228  ;;  %4254 = vpow2.f32 %v836_v41  ;;  %v840_v55 = vmul.f32 1.442695, %v722_v49  ;;  %v725_v56 = vsub.f32 0.0, %v635_v50  ;;  %v630_v57 = vadd.f32 %v5144_v8, %v629_v53  ;;  %v1895_v49 = vld [vmem:[%s5707_s1 + $0x50] sm:$0xff] }
 0x142   :  { %v4231_v58 = vpop.eup %4230  ;;  %4256 = vrcp.f32 %v907_v52  ;;  %v906_v59 = vadd.f32 1.0, %v4229_v54  ;;  %v3842_v60 = vpop.f32.mrf.mxu0  ;;  %3951 = vmatprep.subr.mxu1 %v1895_v49 }
 0x143   :  { %v4233_v61 = vpop.eup %4232  ;;  %4258 = vpow2.f32 %v842_v48  ;;  %v846_v62 = vmul.f32 1.442695, %v725_v56  ;;  %v724_v63 = vsub.f32 0.0, %v630_v57  ;;  %3910 = vmatprep.mubr.msk.f32.mxu1 %vm995_vm2, %v4231_v58  ;;  %v645_v1 = vadd.f32 %v4840_v0, %v3842_v60  ;;  %3952 = vmatpush3.msra.mxu1 %v1895_v49 }
 0x144   :  { %v4235_v2 = vpop.eup %4234  ;;  %4260 = vrcp.f32 %v906_v59  ;;  %3911 = vmatmul.mubr.msk.f32.gmra.mxu1 %vm995_vm2, %v4227_v51  ;;  %v639_v8 = vpop.f32.mrf.mxu0 }
 0x145   :  { %v4237_v3 = vpop.eup %4236  ;;  %v909_v4 = vadd.f32 1.0, %v4235_v2  ;;  %4262 = vpow2.f32 %v840_v55  ;;  %v844_v5 = vmul.f32 1.442695, %v724_v63  ;;  %v727_v6 = vsub.f32 0.0, %v645_v1  ;;  %v1893_v1 = vld [vmem:[%s5707_s1 + $0x40] sm:$0xff] }
 0x146   :  { %v4239_v7 = vpop.eup %4238  ;;  %4264 = vpow2.f32 %v846_v62  ;;  %v640_v9 = vadd.f32 %v4840_v0, %v639_v8  ;;  %3913 = vmatprep.mubr.msk.f32.mxu1 %vm995_vm2, %v4237_v3  ;;  %v3845_v10 = vpop.f32.mrf.mxu0  ;;  %v1894_v62 = vld [vmem:[%s5707_s1 + $0x48] sm:$0xff] }
 0x147   :  { %v4241_v11 = vpop.eup %4240  ;;  %4266 = vrcp.f32 %v909_v4  ;;  %v908_v12 = vadd.f32 1.0, %v4239_v7  ;;  %v850_v13 = vmul.f32 1.442695, %v727_v6  ;;  %v655_v14 = vadd.f32 %v4840_v0, %v3845_v10  ;;  %3953 = vmatprep.subr.mxu1 %v1894_v62 }
 0x148   :  { %v4243_v15 = vpop.eup %4242  ;;  %4268 = vpow2.f32 %v844_v5  ;;  %v726_v16 = vsub.f32 0.0, %v640_v9  ;;  %3914 = vmatmul.mubr.msk.f32.gmra.mxu1 %vm995_vm2, %v4233_v61  ;;  %v649_v17 = vpop.f32.mrf.mxu0 }
 0x149   :  { %v4245_v18 = vpop.eup %4244  ;;  %4270 = vrcp.f32 %v908_v12  ;;  %v911_v19 = vadd.f32 1.0, %v4243_v15  ;;  %v729_v20 = vsub.f32 0.0, %v655_v14  ;;  %v650_v21 = vadd.f32 %v4840_v0, %v649_v17  ;;  %3954 = vmatpush3.msra.mxu1 %v1894_v62 }
 0x14a   :  { %v4247_v22 = vpop.eup %4246  ;;  %4272 = vpow2.f32 %v850_v13  ;;  %v848_v23 = vmul.f32 1.442695, %v726_v16  ;;  %3916 = vmatprep.mubr.msk.f32.mxu1 %vm995_vm2, %v4245_v18  ;;  %v3848_v24 = vpop.f32.mrf.mxu0  ;;  %3955 = vmatprep.subr.mxu1 %v1893_v1 }
 0x14b   :  { %v4249_v25 = vpop.eup %4248  ;;  %4274 = vrcp.f32 %v911_v19  ;;  %v910_v26 = vadd.f32 1.0, %v4247_v22  ;;  %v854_v27 = vmul.f32 1.442695, %v729_v20  ;;  %v728_v28 = vsub.f32 0.0, %v650_v21  ;;  %3956 = vmatpush3.msra.mxu1 %v1893_v1  ;;  %v5286_v19 = vld [vmem:[%s5707_s1 + $0x69] ss:$0 sm:$0xff] }
 0x14c   :  { %v4251_v29 = vpop.eup %4250  ;;  %4276 = vpow2.f32 %v848_v23  ;;  %v665_v30 = vadd.f32 %v4840_v0, %v3848_v24  ;;  %3917 = vmatmul.mubr.msk.f32.gmra.mxu1 %vm995_vm2, %v4241_v11  ;;  %v659_v31 = vpop.f32.mrf.mxu0 }
 0x14d   :  { %v4253_v32 = vpop.eup %4252  ;;  %4278 = vrcp.f32 %v910_v26  ;;  %v913_v33 = vadd.f32 1.0, %v4251_v29  ;;  %v852_v34 = vmul.f32 1.442695, %v728_v28  ;;  %v660_v35 = vadd.f32 %v4840_v0, %v659_v31 }
 0x14e   :  { %v4255_v36 = vpop.eup %4254  ;;  %4280 = vpow2.f32 %v854_v27  ;;  %v731_v37 = vsub.f32 0.0, %v665_v30  ;;  %3919 = vmatprep.mubr.msk.f32.mxu1 %vm995_vm2, %v4253_v32 }
 0x14f   :  { %v4257_v38 = vpop.eup %4256  ;;  %4282 = vrcp.f32 %v913_v33  ;;  %v912_v39 = vadd.f32 1.0, %v4255_v36  ;;  %v730_v40 = vsub.f32 0.0, %v660_v35 }
 0x150   :  { %v4259_v41 = vpop.eup %4258  ;;  %4284 = vpow2.f32 %v852_v34  ;;  %v858_v42 = vmul.f32 1.442695, %v731_v37  ;;  %3920 = vmatmul.mubr.msk.f32.gmra.mxu1 %vm995_vm2, %v4249_v25 }
 0x151   :  { %v4261_v43 = vpop.eup %4260  ;;  %4286 = vrcp.f32 %v912_v39  ;;  %v856_v44 = vmul.f32 1.442695, %v730_v40  ;;  %v915_v46 = vadd.f32 1.0, %v4259_v41 }
 0x152   :  { %v4263_v45 = vpop.eup %4262  ;;  %4288 = vpow2.f32 %v858_v42  ;;  %3922 = vmatprep.mubr.msk.f32.mxu1 %vm995_vm2, %v4261_v43 }
 0x153   :  { %v4265_v47 = vpop.eup %4264  ;;  %v914_v48 = vadd.f32 1.0, %v4263_v45  ;;  %4290 = vpow2.f32 %v856_v44 }
 0x154   :  { %v4267_v50 = vpop.eup %4266  ;;  %3923 = vmatmul.mubr.msk.f32.gmra.mxu1 %vm995_vm2, %v4257_v38  ;;  %v917_v53 = vadd.f32 1.0, %v4265_v47 }
 0x155   :  { %v4269_v51 = vpop.eup %4268  ;;  %4292 = vrcp.f32 %v914_v48 }
 0x156   :  { %v4271_v52 = vpop.eup %4270  ;;  %4294 = vrcp.f32 %v915_v46  ;;  %v916_v54 = vadd.f32 1.0, %v4269_v51 }
 0x157   :  { %v4273_v55 = vpop.eup %4272  ;;  %3925 = vmatprep.mubr.msk.f32.mxu1 %vm995_vm2, %v4271_v52 }
 0x158   :  { %v4275_v56 = vpop.eup %4274  ;;  %4296 = vrcp.f32 %v916_v54  ;;  %3926 = vmatmul.mubr.msk.f32.gmra.mxu1 %vm995_vm2, %v4267_v50  ;;  %v919_v59 = vadd.f32 1.0, %v4273_v55 }
 0x159   :  { %v4277_v57 = vpop.eup %4276  ;;  %4298 = vrcp.f32 %v917_v53 }
 0x15a   :  { %v4279_v58 = vpop.eup %4278  ;;  %v918_v60 = vadd.f32 1.0, %v4277_v57 }
 0x15b   :  { %v4281_v61 = vpop.eup %4280  ;;  %3928 = vmatprep.mubr.msk.f32.mxu1 %vm995_vm2, %v4279_v58 }
 0x15c   :  { %v4283_v63 = vpop.eup %4282  ;;  %4300 = vrcp.f32 %v918_v60  ;;  %3929 = vmatmul.mubr.msk.f32.gmra.mxu1 %vm995_vm2, %v4275_v56  ;;  %v921_v8 = vadd.f32 1.0, %v4281_v61 }
 0x15d   :  { %v4285_v0 = vpop.eup %4284  ;;  %4302 = vrcp.f32 %v919_v59 }
 0x15e   :  { %v4287_v2 = vpop.eup %4286  ;;  %v920_v3 = vadd.f32 1.0, %v4285_v0 }
 0x15f   :  { %v4289_v4 = vpop.eup %4288  ;;  %3931 = vmatprep.mubr.msk.f32.mxu1 %vm995_vm2, %v4287_v2 }
 0x160   :  { %4304 = vrcp.f32 %v920_v3  ;;  %3932 = vmatmul.mubr.msk.f32.gmra.mxu1 %vm995_vm2, %v4283_v63  ;;  %v4291_v5 = vpop.eup %4290  ;;  %v923_v7 = vadd.f32 1.0, %v4289_v4 }
 0x161   :  { %4306 = vrcp.f32 %v921_v8  ;;  %v922_v9 = vadd.f32 1.0, %v4291_v5 }
 0x162   :  { %v4293_v6 = vpop.eup %4292 }
 0x163   :  { %v4295_v10 = vpop.eup %4294  ;;  %3934 = vmatprep.mubr.msk.f32.mxu1 %vm995_vm2, %v4293_v6  ;;  %4308 = vrcp.f32 %v922_v9 }
 0x164   :  { %3935 = vmatmul.mubr.msk.f32.gmra.mxu1 %vm995_vm2, %v4295_v10  ;;  %4310 = vrcp.f32 %v923_v7 }
 0x165   :  { %v4297_v11 = vpop.eup %4296 }
 0x166   :  { %3937 = vmatprep.mubr.msk.f32.mxu1 %vm995_vm2, %v4297_v11  ;;  %v4299_v12 = vpop.eup %4298 }
 0x168   :  { %3938 = vmatmul.mubr.msk.f32.gmra.mxu1 %vm995_vm2, %v4299_v12 }
 0x169   :  { %v4301_v13 = vpop.eup %4300 }
 0x16a   :  { %3940 = vmatprep.mubr.msk.f32.mxu1 %vm995_vm2, %v4301_v13  ;;  %v4303_v14 = vpop.eup %4302 }
 0x16c   :  { %3941 = vmatmul.mubr.msk.f32.gmra.mxu1 %vm995_vm2, %v4303_v14 }
 0x16d   :  { %v4305_v15 = vpop.eup %4304 }
 0x16e   :  { %3943 = vmatprep.mubr.msk.f32.mxu1 %vm995_vm2, %v4305_v15  ;;  %v4307_v16 = vpop.eup %4306 }
 0x170   :  { %3944 = vmatmul.mubr.msk.f32.gmra.mxu1 %vm995_vm2, %v4307_v16  ;;  %v4309_v17 = vpop.eup %4308 }
 0x171   :  { %3946 = vmatprep.mubr.msk.f32.mxu1 %vm995_vm2, %v4309_v17  ;;  %v4311_v18 = vpop.eup %4310 }
 0x174   :  { %3947 = vmatmul.mubr.msk.f32.gmra.mxu1 %vm995_vm2, %v4311_v18 }
 0x1b6   :  { %v3855_v20 = vpop.f32.mrf.mxu1 }
 0x1b7   :  { %v1260_v21 = vadd.f32 %v3855_v20, %v5286_v19 }
 0x1b8   :  { %v1254_v22 = vpop.f32.mrf.mxu1 }
 0x1b9   :  { %v1574_v23 = vsub.f32 0.0, %v1260_v21  ;;  %v1255_v24 = vadd.f32 %v5286_v19, %v1254_v22 }
 0x1ba   :  { %v3858_v25 = vpop.f32.mrf.mxu1 }
 0x1bb   :  { %v1639_v26 = vmul.f32 1.442695, %v1574_v23  ;;  %v1573_v27 = vsub.f32 0.0, %v1255_v24  ;;  %v1270_v28 = vadd.f32 %v3858_v25, %v5286_v19 }
 0x1bc   :  { %v1264_v29 = vpop.f32.mrf.mxu1 }
 0x1bd   :  { %4312 = vpow2.f32 %v1639_v26  ;;  %v1637_v30 = vmul.f32 1.442695, %v1573_v27  ;;  %v1576_v31 = vsub.f32 0.0, %v1270_v28  ;;  %v1265_v32 = vadd.f32 %v5286_v19, %v1264_v29 }
 0x1be   :  { %v3861_v33 = vpop.f32.mrf.mxu1 }
 0x1bf   :  { %4314 = vpow2.f32 %v1637_v30  ;;  %v1643_v34 = vmul.f32 1.442695, %v1576_v31  ;;  %v1575_v35 = vsub.f32 0.0, %v1265_v32  ;;  %v1280_v36 = vadd.f32 %v3861_v33, %v5286_v19 }
 0x1c0   :  { %v1274_v37 = vpop.f32.mrf.mxu1 }
 0x1c1   :  { %4316 = vpow2.f32 %v1643_v34  ;;  %v1641_v38 = vmul.f32 1.442695, %v1575_v35  ;;  %v1578_v39 = vsub.f32 0.0, %v1280_v36  ;;  %v1275_v40 = vadd.f32 %v5286_v19, %v1274_v37 }
 0x1c2   :  { %v3864_v41 = vpop.f32.mrf.mxu1 }
 0x1c3   :  { %4318 = vpow2.f32 %v1641_v38  ;;  %v1647_v42 = vmul.f32 1.442695, %v1578_v39  ;;  %v1577_v43 = vsub.f32 0.0, %v1275_v40  ;;  %v1290_v44 = vadd.f32 %v3864_v41, %v5286_v19 }
 0x1c4   :  { %v1284_v45 = vpop.f32.mrf.mxu1 }
 0x1c5   :  { %4320 = vpow2.f32 %v1647_v42  ;;  %v1645_v46 = vmul.f32 1.442695, %v1577_v43  ;;  %v1580_v47 = vsub.f32 0.0, %v1290_v44  ;;  %v1285_v48 = vadd.f32 %v5286_v19, %v1284_v45 }
 0x1c7   :  { %4322 = vpow2.f32 %v1645_v46  ;;  %v1651_v49 = vmul.f32 1.442695, %v1580_v47  ;;  %v1579_v50 = vsub.f32 0.0, %v1285_v48  ;;  %v3867_v51 = vpop.f32.mrf.mxu1 }
 0x1c8   :  { %v1300_v52 = vadd.f32 %v3867_v51, %v5286_v19 }
 0x1c9   :  { %4324 = vpow2.f32 %v1651_v49  ;;  %v1649_v53 = vmul.f32 1.442695, %v1579_v50  ;;  %v1294_v54 = vpop.f32.mrf.mxu1 }
 0x1ca   :  { %v4313_v55 = vpop.eup %4312  ;;  %v1582_v56 = vsub.f32 0.0, %v1300_v52  ;;  %v1295_v57 = vadd.f32 %v5286_v19, %v1294_v54 }
 0x1cb   :  { %v1766_v58 = vadd.f32 1.0, %v4313_v55  ;;  %4326 = vpow2.f32 %v1649_v53  ;;  %v3870_v59 = vpop.f32.mrf.mxu1 }
 0x1cc   :  { %v4315_v60 = vpop.eup %4314  ;;  %v1655_v61 = vmul.f32 1.442695, %v1582_v56  ;;  %v1581_v62 = vsub.f32 0.0, %v1295_v57  ;;  %v1310_v63 = vadd.f32 %v3870_v59, %v5286_v19 }
 0x1cd   :  { %4328 = vrcp.f32 %v1766_v58  ;;  %v1765_v0 = vadd.f32 1.0, %v4315_v60  ;;  %v1304_v1 = vpop.f32.mrf.mxu1 }
 0x1ce   :  { %v4317_v2 = vpop.eup %4316  ;;  %4330 = vpow2.f32 %v1655_v61  ;;  %v1653_v8 = vmul.f32 1.442695, %v1581_v62  ;;  %v1584_v3 = vsub.f32 0.0, %v1310_v63  ;;  %v1305_v4 = vadd.f32 %v5286_v19, %v1304_v1 }
 0x1cf   :  { %4332 = vrcp.f32 %v1765_v0  ;;  %v1768_v5 = vadd.f32 1.0, %v4317_v2  ;;  %v3873_v6 = vpop.f32.mrf.mxu1 }
 0x1d0   :  { %v4319_v7 = vpop.eup %4318  ;;  %4334 = vpow2.f32 %v1653_v8  ;;  %v1659_v9 = vmul.f32 1.442695, %v1584_v3  ;;  %v1583_v10 = vsub.f32 0.0, %v1305_v4  ;;  %v1320_v11 = vadd.f32 %v3873_v6, %v5286_v19 }
 0x1d1   :  { %4336 = vrcp.f32 %v1768_v5  ;;  %v1767_v12 = vadd.f32 1.0, %v4319_v7  ;;  %v1314_v13 = vpop.f32.mrf.mxu1 }
 0x1d2   :  { %v4321_v14 = vpop.eup %4320  ;;  %4338 = vpow2.f32 %v1659_v9  ;;  %v1657_v15 = vmul.f32 1.442695, %v1583_v10  ;;  %v1586_v16 = vsub.f32 0.0, %v1320_v11  ;;  %v1315_v17 = vadd.f32 %v5286_v19, %v1314_v13 }
 0x1d3   :  { %4340 = vrcp.f32 %v1767_v12  ;;  %v1770_v18 = vadd.f32 1.0, %v4321_v14  ;;  %v3876_v20 = vpop.f32.mrf.mxu1 }
 0x1d4   :  { %v4323_v21 = vpop.eup %4322  ;;  %4342 = vpow2.f32 %v1657_v15  ;;  %v1663_v22 = vmul.f32 1.442695, %v1586_v16  ;;  %v1585_v23 = vsub.f32 0.0, %v1315_v17  ;;  %v1330_v24 = vadd.f32 %v3876_v20, %v5286_v19 }
 0x1d5   :  { %4344 = vrcp.f32 %v1770_v18  ;;  %v1769_v25 = vadd.f32 1.0, %v4323_v21  ;;  %v1324_v26 = vpop.f32.mrf.mxu1 }
 0x1d6   :  { %v4325_v27 = vpop.eup %4324  ;;  %4346 = vpow2.f32 %v1663_v22  ;;  %v1661_v28 = vmul.f32 1.442695, %v1585_v23  ;;  %v1588_v29 = vsub.f32 0.0, %v1330_v24  ;;  %v1325_v30 = vadd.f32 %v5286_v19, %v1324_v26 }
 0x1d7   :  { %4348 = vrcp.f32 %v1769_v25  ;;  %v1772_v31 = vadd.f32 1.0, %v4325_v27 }
 0x1d8   :  { %v4327_v32 = vpop.eup %4326  ;;  %4350 = vpow2.f32 %v1661_v28  ;;  %v1667_v33 = vmul.f32 1.442695, %v1588_v29  ;;  %v1587_v34 = vsub.f32 0.0, %v1325_v30  ;;  %v3879_v35 = vpop.f32.mrf.mxu1 }
 0x1d9   :  { %4352 = vrcp.f32 %v1772_v31  ;;  %v1771_v36 = vadd.f32 1.0, %v4327_v32  ;;  %v1340_v37 = vadd.f32 %v3879_v35, %v5286_v19 }
 0x1da   :  { %v4329_v38 = vpop.eup %4328  ;;  %4354 = vpow2.f32 %v1667_v33  ;;  %v1665_v39 = vmul.f32 1.442695, %v1587_v34  ;;  %v1334_v40 = vpop.f32.mrf.mxu1 }
 0x1db   :  { %v4331_v41 = vpop.eup %4330  ;;  %4356 = vrcp.f32 %v1771_v36  ;;  %v1590_v42 = vsub.f32 0.0, %v1340_v37  ;;  %v1335_v43 = vadd.f32 %v5286_v19, %v1334_v40 }
 0x1dc   :  { %v4333_v44 = vpop.eup %4332  ;;  %v1774_v45 = vadd.f32 1.0, %v4331_v41  ;;  %4358 = vpow2.f32 %v1665_v39  ;;  %v3882_v46 = vpop.f32.mrf.mxu1 }
 0x1dd   :  { %v4335_v47 = vpop.eup %4334  ;;  %v1671_v48 = vmul.f32 1.442695, %v1590_v42  ;;  %v1589_v49 = vsub.f32 0.0, %v1335_v43  ;;  %v1350_v50 = vadd.f32 %v3882_v46, %v5286_v19  ;;  %3957 = vmatprep.mubr.msk.f32.mxu1 %vm1902_vm3, %v4333_v44 }
 0x1de   :  { %v4337_v51 = vpop.eup %4336  ;;  %4360 = vrcp.f32 %v1774_v45  ;;  %v1773_v52 = vadd.f32 1.0, %v4335_v47  ;;  %v1344_v53 = vpop.f32.mrf.mxu1  ;;  %3958 = vmatmul.mubr.msk.f32.vlgmr.msra.gmra.mxu1 %vm1902_vm3, %v4329_v38 }
 0x1df   :  { %v4339_v54 = vpop.eup %4338  ;;  %4362 = vpow2.f32 %v1671_v48  ;;  %v1669_v55 = vmul.f32 1.442695, %v1589_v49  ;;  %v1592_v56 = vsub.f32 0.0, %v1350_v50  ;;  %v1345_v57 = vadd.f32 %v5286_v19, %v1344_v53 }
 0x1e0   :  { %v4341_v58 = vpop.eup %4340  ;;  %4364 = vrcp.f32 %v1773_v52  ;;  %v1776_v59 = vadd.f32 1.0, %v4339_v54  ;;  %v3885_v60 = vpop.f32.mrf.mxu1 }
 0x1e1   :  { %v4343_v61 = vpop.eup %4342  ;;  %4366 = vpow2.f32 %v1669_v55  ;;  %v1675_v62 = vmul.f32 1.442695, %v1592_v56  ;;  %v1591_v63 = vsub.f32 0.0, %v1345_v57  ;;  %v1360_v0 = vadd.f32 %v3885_v60, %v5286_v19  ;;  %3960 = vmatprep.mubr.msk.f32.mxu1 %vm1902_vm3, %v4341_v58 }
 0x1e2   :  { %v4345_v1 = vpop.eup %4344  ;;  %4368 = vrcp.f32 %v1776_v59  ;;  %v1775_v2 = vadd.f32 1.0, %v4343_v61  ;;  %v1354_v8 = vpop.f32.mrf.mxu1  ;;  %3961 = vmatmul.mubr.msk.f32.gmra.mxu1 %vm1902_vm3, %v4337_v51 }
 0x1e3   :  { %v4347_v3 = vpop.eup %4346  ;;  %4370 = vpow2.f32 %v1675_v62  ;;  %v1673_v4 = vmul.f32 1.442695, %v1591_v63  ;;  %v1594_v5 = vsub.f32 0.0, %v1360_v0  ;;  %v1355_v6 = vadd.f32 %v5286_v19, %v1354_v8 }
 0x1e4   :  { %v4349_v7 = vpop.eup %4348  ;;  %4372 = vrcp.f32 %v1775_v2  ;;  %v1778_v9 = vadd.f32 1.0, %v4347_v3  ;;  %v3888_v10 = vpop.f32.mrf.mxu1 }
 0x1e5   :  { %v4351_v11 = vpop.eup %4350  ;;  %4374 = vpow2.f32 %v1673_v4  ;;  %v1679_v12 = vmul.f32 1.442695, %v1594_v5  ;;  %v1593_v13 = vsub.f32 0.0, %v1355_v6  ;;  %v1370_v14 = vadd.f32 %v3888_v10, %v5286_v19  ;;  %3963 = vmatprep.mubr.msk.f32.mxu1 %vm1902_vm3, %v4349_v7 }
 0x1e6   :  { %v4353_v15 = vpop.eup %4352  ;;  %4376 = vrcp.f32 %v1778_v9  ;;  %v1777_v16 = vadd.f32 1.0, %v4351_v11  ;;  %v1364_v17 = vpop.f32.mrf.mxu1  ;;  %3964 = vmatmul.mubr.msk.f32.gmra.mxu1 %vm1902_vm3, %v4345_v1 }
 0x1e7   :  { %v4355_v18 = vpop.eup %4354  ;;  %4378 = vpow2.f32 %v1679_v12  ;;  %v1677_v20 = vmul.f32 1.442695, %v1593_v13  ;;  %v1596_v21 = vsub.f32 0.0, %v1370_v14  ;;  %v1365_v22 = vadd.f32 %v5286_v19, %v1364_v17 }
 0x1e8   :  { %v4357_v23 = vpop.eup %4356  ;;  %4380 = vrcp.f32 %v1777_v16  ;;  %v1780_v24 = vadd.f32 1.0, %v4355_v18  ;;  %v3891_v25 = vpop.f32.mrf.mxu1 }
 0x1e9   :  { %v4359_v26 = vpop.eup %4358  ;;  %4382 = vpow2.f32 %v1677_v20  ;;  %v1683_v27 = vmul.f32 1.442695, %v1596_v21  ;;  %v1595_v28 = vsub.f32 0.0, %v1365_v22  ;;  %v1380_v29 = vadd.f32 %v3891_v25, %v5286_v19  ;;  %3966 = vmatprep.mubr.msk.f32.mxu1 %vm1902_vm3, %v4357_v23 }
 0x1ea   :  { %4384 = vrcp.f32 %v1780_v24  ;;  %v1779_v30 = vadd.f32 1.0, %v4359_v26  ;;  %v1374_v31 = vpop.f32.mrf.mxu1  ;;  %3967 = vmatmul.mubr.msk.f32.gmra.mxu1 %vm1902_vm3, %v4353_v15 }
 0x1eb   :  { %v4361_v32 = vpop.eup %4360  ;;  %4386 = vpow2.f32 %v1683_v27  ;;  %v1681_v33 = vmul.f32 1.442695, %v1595_v28  ;;  %v1598_v34 = vsub.f32 0.0, %v1380_v29  ;;  %v1375_v35 = vadd.f32 %v5286_v19, %v1374_v31 }
 0x1ec   :  { %v4363_v36 = vpop.eup %4362  ;;  %4388 = vrcp.f32 %v1779_v30  ;;  %v3894_v37 = vpop.f32.mrf.mxu1 }
 0x1ed   :  { %v4365_v38 = vpop.eup %4364  ;;  %v1782_v39 = vadd.f32 1.0, %v4363_v36  ;;  %4390 = vpow2.f32 %v1681_v33  ;;  %v1687_v40 = vmul.f32 1.442695, %v1598_v34  ;;  %v1597_v41 = vsub.f32 0.0, %v1375_v35 }
 0x1ee   :  { %v4367_v42 = vpop.eup %4366  ;;  %v1390_v43 = vadd.f32 %v3894_v37, %v5286_v19  ;;  %v1384_v44 = vpop.f32.mrf.mxu1  ;;  %3969 = vmatprep.mubr.msk.f32.mxu1 %vm1902_vm3, %v4365_v38 }
 0x1ef   :  { %v4369_v45 = vpop.eup %4368  ;;  %4392 = vrcp.f32 %v1782_v39  ;;  %v1781_v46 = vadd.f32 1.0, %v4367_v42  ;;  %v1685_v47 = vmul.f32 1.442695, %v1597_v41  ;;  %v1385_v48 = vadd.f32 %v5286_v19, %v1384_v44  ;;  %3970 = vmatmul.mubr.msk.f32.gmra.mxu1 %vm1902_vm3, %v4361_v32 }
 0x1f0   :  { %v4371_v49 = vpop.eup %4370  ;;  %4394 = vpow2.f32 %v1687_v40  ;;  %v1600_v50 = vsub.f32 0.0, %v1390_v43  ;;  %v3897_v51 = vpop.f32.mrf.mxu1 }
 0x1f1   :  { %v4373_v52 = vpop.eup %4372  ;;  %4396 = vrcp.f32 %v1781_v46  ;;  %v1784_v53 = vadd.f32 1.0, %v4371_v49  ;;  %v1599_v54 = vsub.f32 0.0, %v1385_v48  ;;  %v1400_v55 = vadd.f32 %v3897_v51, %v5286_v19 }
 0x1f2   :  { %v4375_v56 = vpop.eup %4374  ;;  %4398 = vpow2.f32 %v1685_v47  ;;  %v1691_v57 = vmul.f32 1.442695, %v1600_v50  ;;  %v1394_v58 = vpop.f32.mrf.mxu1  ;;  %3972 = vmatprep.mubr.msk.f32.mxu1 %vm1902_vm3, %v4373_v52 }
 0x1f3   :  { %v4377_v59 = vpop.eup %4376  ;;  %4400 = vrcp.f32 %v1784_v53  ;;  %v1783_v60 = vadd.f32 1.0, %v4375_v56  ;;  %v1689_v61 = vmul.f32 1.442695, %v1599_v54  ;;  %v1602_v62 = vsub.f32 0.0, %v1400_v55  ;;  %3973 = vmatmul.mubr.msk.f32.gmra.mxu1 %vm1902_vm3, %v4369_v45 }
 0x1f4   :  { %v4379_v63 = vpop.eup %4378  ;;  %4402 = vpow2.f32 %v1691_v57  ;;  %v1395_v0 = vadd.f32 %v5286_v19, %v1394_v58  ;;  %v3900_v1 = vpop.f32.mrf.mxu1 }
 0x1f5   :  { %v4381_v2 = vpop.eup %4380  ;;  %4404 = vrcp.f32 %v1783_v60  ;;  %v1786_v8 = vadd.f32 1.0, %v4379_v63  ;;  %v1695_v3 = vmul.f32 1.442695, %v1602_v62  ;;  %v1410_v4 = vadd.f32 %v3900_v1, %v5286_v19 }
 0x1f6   :  { %v4383_v5 = vpop.eup %4382  ;;  %4406 = vpow2.f32 %v1689_v61  ;;  %v1601_v6 = vsub.f32 0.0, %v1395_v0  ;;  %v1404_v7 = vpop.f32.mrf.mxu1  ;;  %3975 = vmatprep.mubr.msk.f32.mxu1 %vm1902_vm3, %v4381_v2 }
 0x1f7   :  { %v4385_v9 = vpop.eup %4384  ;;  %4408 = vrcp.f32 %v1786_v8  ;;  %v1785_v10 = vadd.f32 1.0, %v4383_v5  ;;  %v1604_v11 = vsub.f32 0.0, %v1410_v4  ;;  %v1405_v12 = vadd.f32 %v5286_v19, %v1404_v7  ;;  %3976 = vmatmul.mubr.msk.f32.gmra.mxu1 %vm1902_vm3, %v4377_v59 }
 0x1f8   :  { %v4387_v13 = vpop.eup %4386  ;;  %4410 = vpow2.f32 %v1695_v3  ;;  %v1693_v14 = vmul.f32 1.442695, %v1601_v6  ;;  %v3903_v15 = vpop.f32.mrf.mxu1 }
 0x1f9   :  { %v4389_v16 = vpop.eup %4388  ;;  %4412 = vrcp.f32 %v1785_v10  ;;  %v1788_v17 = vadd.f32 1.0, %v4387_v13  ;;  %v1699_v18 = vmul.f32 1.442695, %v1604_v11  ;;  %v1603_v20 = vsub.f32 0.0, %v1405_v12 }
 0x1fa   :  { %v4391_v21 = vpop.eup %4390  ;;  %4414 = vpow2.f32 %v1693_v14  ;;  %v1420_v22 = vadd.f32 %v3903_v15, %v5286_v19  ;;  %v1414_v23 = vpop.f32.mrf.mxu1  ;;  %3978 = vmatprep.mubr.msk.f32.mxu1 %vm1902_vm3, %v4389_v16 }
 0x1fb   :  { %4416 = vrcp.f32 %v1788_v17  ;;  %v1787_v24 = vadd.f32 1.0, %v4391_v21  ;;  %v1697_v25 = vmul.f32 1.442695, %v1603_v20  ;;  %v1415_v26 = vadd.f32 %v5286_v19, %v1414_v23  ;;  %3979 = vmatmul.mubr.msk.f32.gmra.mxu1 %vm1902_vm3, %v4385_v9 }
 0x1fc   :  { %v4393_v27 = vpop.eup %4392  ;;  %4418 = vpow2.f32 %v1699_v18  ;;  %v1606_v28 = vsub.f32 0.0, %v1420_v22  ;;  %v3906_v29 = vpop.f32.mrf.mxu1 }
 0x1fd   :  { %v4395_v30 = vpop.eup %4394  ;;  %4420 = vrcp.f32 %v1787_v24  ;;  %v1605_v31 = vsub.f32 0.0, %v1415_v26  ;;  %v1430_v32 = vadd.f32 %v3906_v29, %v5286_v19 }
 0x1fe   :  { %v4397_v33 = vpop.eup %4396  ;;  %v1790_v34 = vadd.f32 1.0, %v4395_v30  ;;  %4422 = vpow2.f32 %v1697_v25  ;;  %v1703_v35 = vmul.f32 1.442695, %v1606_v28  ;;  %v1424_v36 = vpop.f32.mrf.mxu1 }
 0x1ff   :  { %v4399_v37 = vpop.eup %4398  ;;  %v1701_v38 = vmul.f32 1.442695, %v1605_v31  ;;  %v1608_v39 = vsub.f32 0.0, %v1430_v32  ;;  %v1425_v40 = vadd.f32 %v5286_v19, %v1424_v36  ;;  %3981 = vmatprep.mubr.msk.f32.mxu1 %vm1902_vm3, %v4397_v33 }
 0x200   :  { %v4401_v41 = vpop.eup %4400  ;;  %4424 = vrcp.f32 %v1790_v34  ;;  %v1789_v42 = vadd.f32 1.0, %v4399_v37  ;;  %v3909_v43 = vpop.f32.mrf.mxu1  ;;  %3982 = vmatmul.mubr.msk.f32.gmra.mxu1 %vm1902_vm3, %v4393_v27 }
 0x201   :  { %v4403_v44 = vpop.eup %4402  ;;  %4426 = vpow2.f32 %v1703_v35  ;;  %v1707_v45 = vmul.f32 1.442695, %v1608_v39  ;;  %v1607_v46 = vsub.f32 0.0, %v1425_v40  ;;  %v1440_v47 = vadd.f32 %v3909_v43, %v5286_v19 }
 0x202   :  { %v4405_v48 = vpop.eup %4404  ;;  %4428 = vrcp.f32 %v1789_v42  ;;  %v1792_v49 = vadd.f32 1.0, %v4403_v44  ;;  %v1434_v50 = vpop.f32.mrf.mxu1 }
 0x203   :  { %v4407_v51 = vpop.eup %4406  ;;  %4430 = vpow2.f32 %v1701_v38  ;;  %v1705_v52 = vmul.f32 1.442695, %v1607_v46  ;;  %v1610_v53 = vsub.f32 0.0, %v1440_v47  ;;  %v1435_v54 = vadd.f32 %v5286_v19, %v1434_v50  ;;  %3984 = vmatprep.mubr.msk.f32.mxu1 %vm1902_vm3, %v4405_v48 }
 0x204   :  { %v4409_v55 = vpop.eup %4408  ;;  %4432 = vrcp.f32 %v1792_v49  ;;  %v1791_v56 = vadd.f32 1.0, %v4407_v51  ;;  %v3912_v57 = vpop.f32.mrf.mxu1  ;;  %3985 = vmatmul.mubr.msk.f32.gmra.mxu1 %vm1902_vm3, %v4401_v41 }
 0x205   :  { %v4411_v58 = vpop.eup %4410  ;;  %4434 = vpow2.f32 %v1707_v45  ;;  %v1711_v59 = vmul.f32 1.442695, %v1610_v53  ;;  %v1609_v60 = vsub.f32 0.0, %v1435_v54  ;;  %v1450_v61 = vadd.f32 %v3912_v57, %v5286_v19 }
 0x206   :  { %v4413_v62 = vpop.eup %4412  ;;  %4436 = vrcp.f32 %v1791_v56  ;;  %v1794_v63 = vadd.f32 1.0, %v4411_v58  ;;  %v1444_v0 = vpop.f32.mrf.mxu1 }
 0x207   :  { %v4415_v1 = vpop.eup %4414  ;;  %4438 = vpow2.f32 %v1705_v52  ;;  %v1709_v2 = vmul.f32 1.442695, %v1609_v60  ;;  %v1612_v8 = vsub.f32 0.0, %v1450_v61  ;;  %v1445_v3 = vadd.f32 %v5286_v19, %v1444_v0  ;;  %3987 = vmatprep.mubr.msk.f32.mxu1 %vm1902_vm3, %v4413_v62 }
 0x208   :  { %v4417_v4 = vpop.eup %4416  ;;  %4440 = vrcp.f32 %v1794_v63  ;;  %v1793_v5 = vadd.f32 1.0, %v4415_v1  ;;  %v3915_v6 = vpop.f32.mrf.mxu1  ;;  %3988 = vmatmul.mubr.msk.f32.gmra.mxu1 %vm1902_vm3, %v4409_v55 }
 0x209   :  { %v4419_v7 = vpop.eup %4418  ;;  %4442 = vpow2.f32 %v1711_v59  ;;  %v1715_v9 = vmul.f32 1.442695, %v1612_v8  ;;  %v1611_v10 = vsub.f32 0.0, %v1445_v3  ;;  %v1460_v11 = vadd.f32 %v3915_v6, %v5286_v19 }
 0x20a   :  { %v4421_v12 = vpop.eup %4420  ;;  %4444 = vrcp.f32 %v1793_v5  ;;  %v1796_v13 = vadd.f32 1.0, %v4419_v7  ;;  %v1454_v14 = vpop.f32.mrf.mxu1 }
 0x20b   :  { %v4423_v15 = vpop.eup %4422  ;;  %4446 = vpow2.f32 %v1709_v2  ;;  %v1713_v16 = vmul.f32 1.442695, %v1611_v10  ;;  %v1614_v17 = vsub.f32 0.0, %v1460_v11  ;;  %v1455_v18 = vadd.f32 %v5286_v19, %v1454_v14  ;;  %3990 = vmatprep.mubr.msk.f32.mxu1 %vm1902_vm3, %v4421_v12 }
 0x20c   :  { %4448 = vrcp.f32 %v1796_v13  ;;  %v1795_v20 = vadd.f32 1.0, %v4423_v15  ;;  %v3918_v21 = vpop.f32.mrf.mxu1  ;;  %3991 = vmatmul.mubr.msk.f32.gmra.mxu1 %vm1902_vm3, %v4417_v4 }
 0x20d   :  { %v4425_v22 = vpop.eup %4424  ;;  %4450 = vpow2.f32 %v1715_v9  ;;  %v1719_v23 = vmul.f32 1.442695, %v1614_v17  ;;  %v1613_v24 = vsub.f32 0.0, %v1455_v18  ;;  %v1470_v25 = vadd.f32 %v3918_v21, %v5286_v19 }
 0x20e   :  { %v4427_v26 = vpop.eup %4426  ;;  %4452 = vrcp.f32 %v1795_v20  ;;  %v1464_v27 = vpop.f32.mrf.mxu1 }
 0x20f   :  { %v4429_v28 = vpop.eup %4428  ;;  %v1798_v29 = vadd.f32 1.0, %v4427_v26  ;;  %4454 = vpow2.f32 %v1713_v16  ;;  %v1717_v30 = vmul.f32 1.442695, %v1613_v24  ;;  %v1616_v31 = vsub.f32 0.0, %v1470_v25 }
 0x210   :  { %v4431_v32 = vpop.eup %4430  ;;  %4456 = vpow2.f32 %v1719_v23  ;;  %v1465_v33 = vadd.f32 %v5286_v19, %v1464_v27  ;;  %3993 = vmatprep.mubr.msk.f32.mxu1 %vm1902_vm3, %v4429_v28  ;;  %v3921_v34 = vpop.f32.mrf.mxu1 }
 0x211   :  { %v4433_v35 = vpop.eup %4432  ;;  %4458 = vrcp.f32 %v1798_v29  ;;  %v1797_v36 = vadd.f32 1.0, %v4431_v32  ;;  %v1723_v37 = vmul.f32 1.442695, %v1616_v31  ;;  %v1480_v38 = vadd.f32 %v3921_v34, %v5286_v19  ;;  %3994 = vmatmul.mubr.msk.f32.gmra.mxu1 %vm1902_vm3, %v4425_v22 }
 0x212   :  { %v4435_v39 = vpop.eup %4434  ;;  %4460 = vpow2.f32 %v1717_v30  ;;  %v1615_v40 = vsub.f32 0.0, %v1465_v33  ;;  %v1474_v41 = vpop.f32.mrf.mxu1 }
 0x213   :  { %v4437_v42 = vpop.eup %4436  ;;  %4462 = vrcp.f32 %v1797_v36  ;;  %v1800_v43 = vadd.f32 1.0, %v4435_v39  ;;  %v1618_v44 = vsub.f32 0.0, %v1480_v38  ;;  %v1475_v45 = vadd.f32 %v5286_v19, %v1474_v41 }
 0x214   :  { %v4439_v46 = vpop.eup %4438  ;;  %4464 = vpow2.f32 %v1723_v37  ;;  %v1721_v47 = vmul.f32 1.442695, %v1615_v40  ;;  %3996 = vmatprep.mubr.msk.f32.mxu1 %vm1902_vm3, %v4437_v42  ;;  %v3924_v48 = vpop.f32.mrf.mxu1 }
 0x215   :  { %v4441_v49 = vpop.eup %4440  ;;  %4466 = vrcp.f32 %v1800_v43  ;;  %v1799_v50 = vadd.f32 1.0, %v4439_v46  ;;  %v1727_v51 = vmul.f32 1.442695, %v1618_v44  ;;  %v1617_v52 = vsub.f32 0.0, %v1475_v45  ;;  %3997 = vmatmul.mubr.msk.f32.gmra.mxu1 %vm1902_vm3, %v4433_v35 }
 0x216   :  { %v4443_v53 = vpop.eup %4442  ;;  %4468 = vpow2.f32 %v1721_v47  ;;  %v1490_v54 = vadd.f32 %v3924_v48, %v5286_v19  ;;  %v1484_v55 = vpop.f32.mrf.mxu1 }
 0x217   :  { %v4445_v56 = vpop.eup %4444  ;;  %4470 = vrcp.f32 %v1799_v50  ;;  %v1802_v57 = vadd.f32 1.0, %v4443_v53  ;;  %v1725_v58 = vmul.f32 1.442695, %v1617_v52  ;;  %v1485_v59 = vadd.f32 %v5286_v19, %v1484_v55 }
 0x218   :  { %v4447_v60 = vpop.eup %4446  ;;  %4472 = vpow2.f32 %v1727_v51  ;;  %v1620_v61 = vsub.f32 0.0, %v1490_v54  ;;  %3999 = vmatprep.mubr.msk.f32.mxu1 %vm1902_vm3, %v4445_v56  ;;  %v3927_v62 = vpop.f32.mrf.mxu1 }
 0x219   :  { %v4449_v63 = vpop.eup %4448  ;;  %4474 = vrcp.f32 %v1802_v57  ;;  %v1801_v0 = vadd.f32 1.0, %v4447_v60  ;;  %v1619_v1 = vsub.f32 0.0, %v1485_v59  ;;  %v1500_v2 = vadd.f32 %v3927_v62, %v5286_v19  ;;  %4000 = vmatmul.mubr.msk.f32.gmra.mxu1 %vm1902_vm3, %v4441_v49 }
 0x21a   :  { %v4451_v8 = vpop.eup %4450  ;;  %4476 = vpow2.f32 %v1725_v58  ;;  %v1731_v3 = vmul.f32 1.442695, %v1620_v61  ;;  %v1494_v4 = vpop.f32.mrf.mxu1 }
 0x21b   :  { %v4453_v5 = vpop.eup %4452  ;;  %4478 = vrcp.f32 %v1801_v0  ;;  %v1804_v6 = vadd.f32 1.0, %v4451_v8  ;;  %v1729_v7 = vmul.f32 1.442695, %v1619_v1  ;;  %v1622_v9 = vsub.f32 0.0, %v1500_v2 }
 0x21c   :  { %v4455_v10 = vpop.eup %4454  ;;  %4480 = vpow2.f32 %v1731_v3  ;;  %v1495_v11 = vadd.f32 %v5286_v19, %v1494_v4  ;;  %4002 = vmatprep.mubr.msk.f32.mxu1 %vm1902_vm3, %v4453_v5  ;;  %v3930_v12 = vpop.f32.mrf.mxu1 }
 0x21d   :  { %v4457_v13 = vpop.eup %4456  ;;  %4482 = vrcp.f32 %v1804_v6  ;;  %v1803_v14 = vadd.f32 1.0, %v4455_v10  ;;  %v1735_v15 = vmul.f32 1.442695, %v1622_v9  ;;  %v1510_v16 = vadd.f32 %v3930_v12, %v5286_v19  ;;  %4003 = vmatmul.mubr.msk.f32.gmra.mxu1 %vm1902_vm3, %v4449_v63  ;;  %v4841_v10 = vld [vmem:[%s5707_s1 + $0x69] ss:$0 sm:$0xff] }
 0x21e   :  { %v4459_v17 = vpop.eup %4458  ;;  %v1806_v18 = vadd.f32 1.0, %v4457_v13  ;;  %4484 = vpow2.f32 %v1729_v7  ;;  %v1621_v20 = vsub.f32 0.0, %v1495_v11  ;;  %v1504_v21 = vpop.f32.mrf.mxu1 }
 0x21f   :  { %v4461_v22 = vpop.eup %4460  ;;  %4486 = vrcp.f32 %v1803_v14  ;;  %v1624_v23 = vsub.f32 0.0, %v1510_v16  ;;  %v1505_v24 = vadd.f32 %v5286_v19, %v1504_v21 }
 0x220   :  { %v4463_v25 = vpop.eup %4462  ;;  %4488 = vrcp.f32 %v1806_v18  ;;  %v1805_v26 = vadd.f32 1.0, %v4461_v22  ;;  %v1733_v27 = vmul.f32 1.442695, %v1621_v20  ;;  %v3933_v28 = vpop.f32.mrf.mxu1 }
 0x221   :  { %v4465_v29 = vpop.eup %4464  ;;  %4490 = vpow2.f32 %v1735_v15  ;;  %v1739_v30 = vmul.f32 1.442695, %v1624_v23  ;;  %v1623_v31 = vsub.f32 0.0, %v1505_v24  ;;  %4005 = vmatprep.mubr.msk.f32.mxu1 %vm1902_vm3, %v4463_v25  ;;  %v1520_v32 = vadd.f32 %v3933_v28, %v5286_v19 }
 0x222   :  { %v4467_v33 = vpop.eup %4466  ;;  %4492 = vrcp.f32 %v1805_v26  ;;  %v1808_v34 = vadd.f32 1.0, %v4465_v29  ;;  %4006 = vmatmul.mubr.msk.f32.gmra.mxu1 %vm1902_vm3, %v4459_v17  ;;  %v1514_v35 = vpop.f32.mrf.mxu1 }
 0x223   :  { %v4469_v36 = vpop.eup %4468  ;;  %4494 = vpow2.f32 %v1733_v27  ;;  %v1737_v37 = vmul.f32 1.442695, %v1623_v31  ;;  %v1626_v38 = vsub.f32 0.0, %v1520_v32  ;;  %v1515_v39 = vadd.f32 %v5286_v19, %v1514_v35 }
 0x224   :  { %v4471_v40 = vpop.eup %4470  ;;  %4496 = vrcp.f32 %v1808_v34  ;;  %v1807_v41 = vadd.f32 1.0, %v4469_v36  ;;  %v3936_v42 = vpop.f32.mrf.mxu1 }
 0x225   :  { %v4473_v43 = vpop.eup %4472  ;;  %4498 = vpow2.f32 %v1739_v30  ;;  %v1743_v44 = vmul.f32 1.442695, %v1626_v38  ;;  %v1625_v45 = vsub.f32 0.0, %v1515_v39  ;;  %4008 = vmatprep.mubr.msk.f32.mxu1 %vm1902_vm3, %v4471_v40  ;;  %v1530_v46 = vadd.f32 %v3936_v42, %v5286_v19 }
 0x226   :  { %v4475_v47 = vpop.eup %4474  ;;  %4500 = vrcp.f32 %v1807_v41  ;;  %v1810_v48 = vadd.f32 1.0, %v4473_v43  ;;  %4009 = vmatmul.mubr.msk.f32.gmra.mxu1 %vm1902_vm3, %v4467_v33  ;;  %v1524_v49 = vpop.f32.mrf.mxu1 }
 0x227   :  { %v4477_v50 = vpop.eup %4476  ;;  %4502 = vpow2.f32 %v1737_v37  ;;  %v1741_v51 = vmul.f32 1.442695, %v1625_v45  ;;  %v1628_v52 = vsub.f32 0.0, %v1530_v46  ;;  %v1525_v53 = vadd.f32 %v5286_v19, %v1524_v49 }
 0x228   :  { %v4479_v54 = vpop.eup %4478  ;;  %4504 = vrcp.f32 %v1810_v48  ;;  %v1809_v55 = vadd.f32 1.0, %v4477_v50  ;;  %v3939_v56 = vpop.f32.mrf.mxu1 }
 0x229   :  { %v4481_v57 = vpop.eup %4480  ;;  %4506 = vpow2.f32 %v1743_v44  ;;  %v1747_v58 = vmul.f32 1.442695, %v1628_v52  ;;  %v1627_v59 = vsub.f32 0.0, %v1525_v53  ;;  %4011 = vmatprep.mubr.msk.f32.mxu1 %vm1902_vm3, %v4479_v54  ;;  %v1540_v60 = vadd.f32 %v3939_v56, %v5286_v19 }
 0x22a   :  { %v4483_v61 = vpop.eup %4482  ;;  %4508 = vrcp.f32 %v1809_v55  ;;  %v1812_v62 = vadd.f32 1.0, %v4481_v57  ;;  %4012 = vmatmul.mubr.msk.f32.gmra.mxu1 %vm1902_vm3, %v4475_v47  ;;  %v1534_v63 = vpop.f32.mrf.mxu1 }
 0x22b   :  { %v4485_v0 = vpop.eup %4484  ;;  %4510 = vpow2.f32 %v1741_v51  ;;  %v1745_v1 = vmul.f32 1.442695, %v1627_v59  ;;  %v1630_v2 = vsub.f32 0.0, %v1540_v60  ;;  %v1535_v8 = vadd.f32 %v5286_v19, %v1534_v63 }
 0x22c   :  { %v4487_v3 = vpop.eup %4486  ;;  %4512 = vrcp.f32 %v1812_v62  ;;  %v1811_v4 = vadd.f32 1.0, %v4485_v0  ;;  %v3942_v5 = vpop.f32.mrf.mxu1 }
 0x22d   :  { %v4489_v6 = vpop.eup %4488  ;;  %4514 = vpow2.f32 %v1747_v58  ;;  %v1751_v7 = vmul.f32 1.442695, %v1630_v2  ;;  %v1629_v9 = vsub.f32 0.0, %v1535_v8  ;;  %4014 = vmatprep.mubr.msk.f32.mxu1 %vm1902_vm3, %v4487_v3  ;;  %v1550_v11 = vadd.f32 %v4841_v10, %v3942_v5 }
 0x22e   :  { %v4491_v12 = vpop.eup %4490  ;;  %4516 = vrcp.f32 %v1811_v4  ;;  %4015 = vmatmul.mubr.msk.f32.gmra.mxu1 %vm1902_vm3, %v4483_v61  ;;  %v1544_v19 = vpop.f32.mrf.mxu1 }
 0x22f   :  { %v4493_v13 = vpop.eup %4492  ;;  %v1814_v14 = vadd.f32 1.0, %v4491_v12  ;;  %4518 = vpow2.f32 %v1745_v1  ;;  %v1749_v15 = vmul.f32 1.442695, %v1629_v9  ;;  %v1632_v16 = vsub.f32 0.0, %v1550_v11 }
 0x230   :  { %v4495_v17 = vpop.eup %4494  ;;  %4520 = vpow2.f32 %v1751_v7  ;;  %v1545_v18 = vadd.f32 %v4841_v10, %v1544_v19  ;;  %4017 = vmatprep.mubr.msk.f32.mxu1 %vm1902_vm3, %v4493_v13  ;;  %v3945_v20 = vpop.f32.mrf.mxu1 }
 0x231   :  { %v4497_v21 = vpop.eup %4496  ;;  %4522 = vrcp.f32 %v1814_v14  ;;  %v1813_v22 = vadd.f32 1.0, %v4495_v17  ;;  %v1755_v23 = vmul.f32 1.442695, %v1632_v16  ;;  %v1560_v24 = vadd.f32 %v4841_v10, %v3945_v20 }
 0x232   :  { %v4499_v25 = vpop.eup %4498  ;;  %4524 = vpow2.f32 %v1749_v15  ;;  %v1631_v26 = vsub.f32 0.0, %v1545_v18  ;;  %4018 = vmatmul.mubr.msk.f32.gmra.mxu1 %vm1902_vm3, %v4489_v6  ;;  %v1554_v27 = vpop.f32.mrf.mxu1 }
 0x233   :  { %v4501_v28 = vpop.eup %4500  ;;  %4526 = vrcp.f32 %v1813_v22  ;;  %v1816_v29 = vadd.f32 1.0, %v4499_v25  ;;  %v1634_v30 = vsub.f32 0.0, %v1560_v24  ;;  %v1555_v31 = vadd.f32 %v4841_v10, %v1554_v27 }
 0x234   :  { %v4503_v32 = vpop.eup %4502  ;;  %4528 = vpow2.f32 %v1755_v23  ;;  %v1753_v33 = vmul.f32 1.442695, %v1631_v26  ;;  %4020 = vmatprep.mubr.msk.f32.mxu1 %vm1902_vm3, %v4501_v28  ;;  %v3948_v34 = vpop.f32.mrf.mxu1 }
 0x235   :  { %v4505_v35 = vpop.eup %4504  ;;  %4530 = vrcp.f32 %v1816_v29  ;;  %v1815_v36 = vadd.f32 1.0, %v4503_v32  ;;  %v1759_v37 = vmul.f32 1.442695, %v1634_v30  ;;  %v1633_v38 = vsub.f32 0.0, %v1555_v31 }
 0x236   :  { %v4507_v39 = vpop.eup %4506  ;;  %4532 = vpow2.f32 %v1753_v33  ;;  %v1570_v40 = vadd.f32 %v4841_v10, %v3948_v34  ;;  %4021 = vmatmul.mubr.msk.f32.gmra.mxu1 %vm1902_vm3, %v4497_v21  ;;  %v1564_v41 = vpop.f32.mrf.mxu1 }
 0x237   :  { %v4509_v42 = vpop.eup %4508  ;;  %4534 = vrcp.f32 %v1815_v36  ;;  %v1818_v43 = vadd.f32 1.0, %v4507_v39  ;;  %v1757_v44 = vmul.f32 1.442695, %v1633_v38  ;;  %v1565_v45 = vadd.f32 %v4841_v10, %v1564_v41 }
 0x238   :  { %v4511_v46 = vpop.eup %4510  ;;  %4536 = vpow2.f32 %v1759_v37  ;;  %v1636_v47 = vsub.f32 0.0, %v1570_v40  ;;  %4023 = vmatprep.mubr.msk.f32.mxu1 %vm1902_vm3, %v4509_v42  ;;  %v5434_v42 = vld [vmem:[%s5707_s1 + $0x60] sm:$0xff] }
 0x239   :  { %v4513_v48 = vpop.eup %4512  ;;  %4538 = vrcp.f32 %v1818_v43  ;;  %v1817_v49 = vadd.f32 1.0, %v4511_v46  ;;  %v1635_v50 = vsub.f32 0.0, %v1565_v45  ;;  %3705 = vmatprep.mubr.msk.f32.mxu0 %vm2802_vm4, %v5434_v42 }
 0x23a   :  { %v4515_v51 = vpop.eup %4514  ;;  %4540 = vpow2.f32 %v1757_v44  ;;  %v1763_v52 = vmul.f32 1.442695, %v1636_v47  ;;  %4024 = vmatmul.mubr.msk.f32.gmra.mxu1 %vm1902_vm3, %v4505_v35 }
 0x23b   :  { %v4517_v53 = vpop.eup %4516  ;;  %4542 = vrcp.f32 %v1817_v49  ;;  %v1761_v54 = vmul.f32 1.442695, %v1635_v50  ;;  %v1820_v56 = vadd.f32 1.0, %v4515_v51 }
 0x23c   :  { %v4519_v55 = vpop.eup %4518  ;;  %4544 = vpow2.f32 %v1763_v52  ;;  %4026 = vmatprep.mubr.msk.f32.mxu1 %vm1902_vm3, %v4517_v53  ;;  %v5457_v52 = vld [vmem:[%s5707_s1 + $0x6a] ss:$0 sm:$0xff] }
 0x23d   :  { %v4521_v57 = vpop.eup %4520  ;;  %v1819_v58 = vadd.f32 1.0, %v4519_v55  ;;  %4546 = vpow2.f32 %v1761_v54 }
 0x23e   :  { %v4523_v59 = vpop.eup %4522  ;;  %4027 = vmatmul.mubr.msk.f32.gmra.mxu1 %vm1902_vm3, %v4513_v48  ;;  %v1822_v62 = vadd.f32 1.0, %v4521_v57 }
 0x23f   :  { %v4525_v60 = vpop.eup %4524  ;;  %4548 = vrcp.f32 %v1819_v58 }
 0x240   :  { %v4527_v61 = vpop.eup %4526  ;;  %4550 = vrcp.f32 %v1820_v56  ;;  %v1821_v63 = vadd.f32 1.0, %v4525_v60 }
 0x241   :  { %v4529_v0 = vpop.eup %4528  ;;  %4029 = vmatprep.mubr.msk.f32.mxu1 %vm1902_vm3, %v4527_v61 }
 0x242   :  { %v4531_v1 = vpop.eup %4530  ;;  %4552 = vrcp.f32 %v1821_v63  ;;  %4030 = vmatmul.mubr.msk.f32.gmra.mxu1 %vm1902_vm3, %v4523_v59  ;;  %v1824_v3 = vadd.f32 1.0, %v4529_v0 }
 0x243   :  { %v4533_v2 = vpop.eup %4532  ;;  %4554 = vrcp.f32 %v1822_v62 }
 0x244   :  { %v4535_v8 = vpop.eup %4534  ;;  %v1823_v4 = vadd.f32 1.0, %v4533_v2 }
 0x245   :  { %v4537_v5 = vpop.eup %4536  ;;  %4032 = vmatprep.mubr.msk.f32.mxu1 %vm1902_vm3, %v4535_v8 }
 0x246   :  { %v4539_v6 = vpop.eup %4538  ;;  %4556 = vrcp.f32 %v1823_v4  ;;  %4033 = vmatmul.mubr.msk.f32.gmra.mxu1 %vm1902_vm3, %v4531_v1  ;;  %v1826_v10 = vadd.f32 1.0, %v4537_v5 }
 0x247   :  { %v4541_v7 = vpop.eup %4540  ;;  %4558 = vrcp.f32 %v1824_v3 }
 0x248   :  { %v4543_v9 = vpop.eup %4542  ;;  %v1825_v11 = vadd.f32 1.0, %v4541_v7 }
 0x249   :  { %v4545_v12 = vpop.eup %4544  ;;  %4035 = vmatprep.mubr.msk.f32.mxu1 %vm1902_vm3, %v4543_v9 }
 0x24a   :  { %4560 = vrcp.f32 %v1825_v11  ;;  %4036 = vmatmul.mubr.msk.f32.gmra.mxu1 %vm1902_vm3, %v4539_v6  ;;  %v4547_v19 = vpop.eup %4546  ;;  %v1828_v14 = vadd.f32 1.0, %v4545_v12 }
 0x24b   :  { %4562 = vrcp.f32 %v1826_v10  ;;  %v1827_v15 = vadd.f32 1.0, %v4547_v19 }
 0x24c   :  { %v4549_v13 = vpop.eup %4548 }
 0x24d   :  { %v4551_v16 = vpop.eup %4550  ;;  %4038 = vmatprep.mubr.msk.f32.mxu1 %vm1902_vm3, %v4549_v13  ;;  %4564 = vrcp.f32 %v1827_v15 }
 0x24e   :  { %4039 = vmatmul.mubr.msk.f32.gmra.mxu1 %vm1902_vm3, %v4551_v16  ;;  %4566 = vrcp.f32 %v1828_v14 }
 0x24f   :  { %v4553_v17 = vpop.eup %4552 }
 0x250   :  { %4041 = vmatprep.mubr.msk.f32.mxu1 %vm1902_vm3, %v4553_v17  ;;  %v4555_v18 = vpop.eup %4554 }
 0x252   :  { %4042 = vmatmul.mubr.msk.f32.gmra.mxu1 %vm1902_vm3, %v4555_v18 }
 0x253   :  { %v4557_v20 = vpop.eup %4556 }
 0x254   :  { %4044 = vmatprep.mubr.msk.f32.mxu1 %vm1902_vm3, %v4557_v20  ;;  %v4559_v21 = vpop.eup %4558 }
 0x256   :  { %4045 = vmatmul.mubr.msk.f32.gmra.mxu1 %vm1902_vm3, %v4559_v21 }
 0x257   :  { %v4561_v22 = vpop.eup %4560 }
 0x258   :  { %4047 = vmatprep.mubr.msk.f32.mxu1 %vm1902_vm3, %v4561_v22  ;;  %v4563_v23 = vpop.eup %4562 }
 0x25a   :  { %4048 = vmatmul.mubr.msk.f32.gmra.mxu1 %vm1902_vm3, %v4563_v23  ;;  %v4565_v24 = vpop.eup %4564 }
 0x25b   :  { %4050 = vmatprep.mubr.msk.f32.mxu1 %vm1902_vm3, %v4565_v24  ;;  %v4567_v25 = vpop.eup %4566 }
 0x25e   :  { %4051 = vmatmul.mubr.msk.f32.gmra.mxu1 %vm1902_vm3, %v4567_v25 }
 0x29e   :  { %v5413_v26 = vpop.f32.mrf.mxu1 }
 0x2a0   :  { %v5415_v27 = vpop.f32.mrf.mxu1 }
 0x2a2   :  { %v3962_v28 = vpop.f32.mrf.mxu1 }
 0x2a3   :  { %v2177_v16 = vadd.f32 %v3962_v28, %v5457_v52 }
 0x2a4   :  { %v5417_v29 = vpop.f32.mrf.mxu1 }
 0x2a5   :  { %v2483_v28 = vsub.f32 0.0, %v2177_v16 }
 0x2a6   :  { %v5419_v30 = vpop.f32.mrf.mxu1 }
 0x2a8   :  { %v5421_v31 = vpop.f32.mrf.mxu1 }
 0x2aa   :  { %v5423_v32 = vpop.f32.mrf.mxu1 }
 0x2ac   :  { %v5425_v33 = vpop.f32.mrf.mxu1 }
 0x2af   :  { %v5427_v34 = vpop.f32.mrf.mxu1 }
 0x2b1   :  { %v5429_v35 = vpop.f32.mrf.mxu1 }
 0x2b3   :  { %v3974_v36 = vpop.f32.mrf.mxu1 }
 0x2b4   :  { %v2217_v17 = vadd.f32 %v3974_v36, %v5457_v52 }
 0x2b5   :  { %v2211_v37 = vpop.f32.mrf.mxu1 }
 0x2b6   :  { %v2212_v23 = vadd.f32 %v5457_v52, %v2211_v37 }
 0x2b7   :  { %v3977_v38 = vpop.f32.mrf.mxu1 }
 0x2b8   :  { %v2227_v0 = vadd.f32 %v3977_v38, %v5457_v52 }
 0x2b9   :  { %v2221_v39 = vpop.f32.mrf.mxu1 }
 0x2ba   :  { %v2493_v6 = vsub.f32 0.0, %v2227_v0  ;;  %v2222_v7 = vadd.f32 %v5457_v52, %v2221_v39 }
 0x2bb   :  { %v3980_v40 = vpop.f32.mrf.mxu1 }
 0x2bc   :  { %v2237_v53 = vadd.f32 %v3980_v40, %v5457_v52  ;;  %v2570_v18 = vmul.f32 1.442695, %v2493_v6  ;;  %v2492_v20 = vsub.f32 0.0, %v2222_v7  ;;  %v2491_v40 = vsub.f32 0.0, %v2217_v17 }
 0x2bd   :  { %v2231_v41 = vpop.f32.mrf.mxu1 }
 0x2be   :  { %v2495_v56 = vsub.f32 0.0, %v2237_v53  ;;  %v2232_v57 = vadd.f32 %v5457_v52, %v2231_v41  ;;  %v2568_v36 = vmul.f32 1.442695, %v2492_v20  ;;  %v2490_v53 = vsub.f32 0.0, %v2212_v23 }
 0x2c0   :  { %v5436_v43 = vpop.f32.mrf.mxu1  ;;  %v2574_v61 = vmul.f32 1.442695, %v2495_v56  ;;  %v2494_v62 = vsub.f32 0.0, %v2232_v57 }
 0x2c2   :  { %v5440_v44 = vpop.f32.mrf.mxu1  ;;  %4568 = vpow2.f32 %v2574_v61  ;;  %v2572_v4 = vmul.f32 1.442695, %v2494_v62  ;;  %v2566_v61 = vmul.f32 1.442695, %v2491_v40 }
 0x2c4   :  { %v5442_v45 = vpop.f32.mrf.mxu1  ;;  %4570 = vpow2.f32 %v2572_v4 }
 0x2c6   :  { %v5444_v46 = vpop.f32.mrf.mxu1 }
 0x2c8   :  { %v5446_v47 = vpop.f32.mrf.mxu1 }
 0x2ca   :  { %v5448_v48 = vpop.f32.mrf.mxu1 }
 0x2cc   :  { %v5450_v49 = vpop.f32.mrf.mxu1 }
 0x2cd   :  { %v2277_v7 = vadd.f32 %v5450_v49, %v5457_v52 }
 0x2ce   :  { %v5452_v50 = vpop.f32.mrf.mxu1 }
 0x2cf   :  { %v2503_v20 = vsub.f32 0.0, %v2277_v7 }
 0x2d1   :  { %v3995_v51 = vpop.f32.mrf.mxu1 }
 0x2d3   :  { %v2281_v54 = vpop.f32.mrf.mxu1 }
 0x2d5   :  { %v3998_v55 = vpop.f32.mrf.mxu1 }
 0x2d6   :  { %v2297_v12 = vadd.f32 %v3998_v55, %v5457_v52  ;;  %v2287_v55 = vadd.f32 %v3995_v51, %v5457_v52 }
 0x2d7   :  { %v2291_v58 = vpop.f32.mrf.mxu1 }
 0x2d8   :  { %v2507_v24 = vsub.f32 0.0, %v2297_v12  ;;  %v2292_v25 = vadd.f32 %v5457_v52, %v2291_v58  ;;  %v2207_v58 = vadd.f32 %v5427_v34, %v5457_v52  ;;  %v2505_v0 = vsub.f32 0.0, %v2287_v55 }
 0x2d9   :  { %v4001_v59 = vpop.f32.mrf.mxu1 }
 0x2da   :  { %v2307_v60 = vadd.f32 %v4001_v59, %v5457_v52  ;;  %v2598_v56 = vmul.f32 1.442695, %v2507_v24  ;;  %v2506_v57 = vsub.f32 0.0, %v2292_v25  ;;  %v2550_v59 = vmul.f32 1.442695, %v2483_v28 }
 0x2db   :  { %v2301_v63 = vpop.f32.mrf.mxu1  ;;  %v2192_v28 = vadd.f32 %v5457_v52, %v5425_v33  ;;  %v2187_v33 = vadd.f32 %v5419_v30, %v5457_v52 }
 0x2dc   :  { %v2509_v1 = vsub.f32 0.0, %v2307_v60  ;;  %v2302_v8 = vadd.f32 %v5457_v52, %v2301_v63  ;;  %v4569_v60 = vpop.eup %4568  ;;  %v2564_v63 = vmul.f32 1.442695, %v2490_v53  ;;  %v2596_v51 = vmul.f32 1.442695, %v2506_v57 }
 0x2dd   :  { %v4004_v2 = vpop.f32.mrf.mxu1  ;;  %v2687_v4 = vadd.f32 1.0, %v4569_v60  ;;  %v4571_v34 = vpop.eup %4570 }
 0x2de   :  { %v2317_v3 = vadd.f32 %v4004_v2, %v5457_v52  ;;  %v2602_v11 = vmul.f32 1.442695, %v2509_v1  ;;  %v2508_v19 = vsub.f32 0.0, %v2302_v8  ;;  %v2282_v1 = vadd.f32 %v5457_v52, %v2281_v54 }
 0x2df   :  { %v2311_v5 = vpop.f32.mrf.mxu1  ;;  %v2489_v8 = vsub.f32 0.0, %v2207_v58  ;;  %v2594_v54 = vmul.f32 1.442695, %v2505_v0  ;;  %v2686_v16 = vadd.f32 1.0, %v4571_v34 }
 0x2e0   :  { %v2511_v9 = vsub.f32 0.0, %v2317_v3  ;;  %v2312_v10 = vadd.f32 %v5457_v52, %v2311_v5  ;;  %v2600_v38 = vmul.f32 1.442695, %v2508_v19  ;;  %v2202_v3 = vadd.f32 %v5457_v52, %v5429_v35 }
 0x2e1   :  { %v2197_v35 = vadd.f32 %v5423_v32, %v5457_v52 }
 0x2e2   :  { %v2606_v13 = vmul.f32 1.442695, %v2511_v9  ;;  %v2510_v14 = vsub.f32 0.0, %v2312_v10  ;;  %v5468_v15 = vpop.f32.mrf.mxu1  ;;  %v2504_v9 = vsub.f32 0.0, %v2282_v1 }
 0x2e4   :  { %4572 = vpow2.f32 %v2606_v13  ;;  %v2604_v21 = vmul.f32 1.442695, %v2510_v14  ;;  %v5472_v22 = vpop.f32.mrf.mxu1  ;;  %v2562_v13 = vmul.f32 1.442695, %v2489_v8  ;;  %v2488_v14 = vsub.f32 0.0, %v2202_v3 }
 0x2e5   :  { %4574 = vpow2.f32 %v2602_v11  ;;  %v2592_v23 = vmul.f32 1.442695, %v2504_v9  ;;  %v2262_v3 = vadd.f32 %v5457_v52, %v5448_v48  ;;  %v2182_v9 = vadd.f32 %v5457_v52, %v5421_v31 }
 0x2e6   :  { %4576 = vpow2.f32 %v2604_v21  ;;  %v5476_v39 = vpop.f32.mrf.mxu1  ;;  %v2272_v21 = vadd.f32 %v5457_v52, %v5452_v50  ;;  %v2560_v40 = vmul.f32 1.442695, %v2488_v14  ;;  %v2267_v50 = vadd.f32 %v5446_v47, %v5457_v52 }
 0x2e7   :  { %4578 = vpow2.f32 %v2570_v18 }
 0x2e8   :  { %v5478_v41 = vpop.f32.mrf.mxu1  ;;  %4580 = vpow2.f32 %v2600_v38  ;;  %v2487_v38 = vsub.f32 0.0, %v2197_v35  ;;  %v2502_v57 = vsub.f32 0.0, %v2272_v21  ;;  %v2501_v8 = vsub.f32 0.0, %v2267_v50 }
 0x2e9   :  { %4582 = vpow2.f32 %v2568_v36  ;;  %v2172_v21 = vadd.f32 %v5457_v52, %v5417_v29  ;;  %v4844_v50 = vmov 0  }
 0x2ea   :  { %v5481_v37 = vpop.f32.mrf.mxu1  ;;  %4584 = vpow2.f32 %v2598_v56  ;;  %v2590_v56 = vmul.f32 1.442695, %v2503_v20  ;;  %v2586_v14 = vmul.f32 1.442695, %v2501_v8  ;;  %4055 = vset.pattern.permute.xlu0 %v4844_v50 }
 0x2eb   :  { %4586 = vpow2.f32 %v2550_v59 }
 0x2ec   :  { %v5485_v62 = vpop.f32.mrf.mxu1  ;;  %4588 = vpow2.f32 %v2566_v61  ;;  %v2558_v61 = vmul.f32 1.442695, %v2487_v38  ;;  %v2252_v38 = vadd.f32 %v5457_v52, %v5444_v46 }
 0x2ed   :  { %4590 = vpow2.f32 %v2564_v63  ;;  %v2486_v63 = vsub.f32 0.0, %v2192_v28 }
 0x2ee   :  { %v5488_v2 = vpop.f32.mrf.mxu1  ;;  %4592 = vpow2.f32 %v2596_v51 }
 0x2ef   :  { %4594 = vrcp.f32 %v2687_v4  ;;  %v2588_v4 = vmul.f32 1.442695, %v2502_v57 }
 0x2f0   :  { %v5492_v5 = vpop.f32.mrf.mxu1 }
 0x2f1   :  { %v4573_v6 = vpop.eup %4572 }
 0x2f2   :  { %v4575_v10 = vpop.eup %4574  ;;  %v2703_v11 = vadd.f32 1.0, %v4573_v6  ;;  %v5496_v12 = vpop.f32.mrf.mxu1 }
 0x2f3   :  { %v4577_v19 = vpop.eup %4576  ;;  %v2701_v24 = vadd.f32 1.0, %v4575_v10  ;;  %v2556_v10 = vmul.f32 1.442695, %v2486_v63 }
 0x2f4   :  { %4596 = vrcp.f32 %v2703_v11  ;;  %v2702_v17 = vadd.f32 1.0, %v4577_v19  ;;  %v5500_v18 = vpop.f32.mrf.mxu1  ;;  %v4579_v49 = vpop.eup %4578 }
 0x2f5   :  { %4598 = vpow2.f32 %v2594_v54  ;;  %v4581_v32 = vpop.eup %4580  ;;  %v2685_v36 = vadd.f32 1.0, %v4579_v49  ;;  %v2485_v54 = vsub.f32 0.0, %v2187_v33 }
 0x2f6   :  { %4600 = vrcp.f32 %v2702_v17  ;;  %v5504_v25 = vpop.f32.mrf.mxu1  ;;  %v4583_v55 = vpop.eup %4582  ;;  %v2700_v59 = vadd.f32 1.0, %v4581_v32 }
 0x2f7   :  { %4602 = vpow2.f32 %v2562_v13  ;;  %v4585_v60 = vpop.eup %4584  ;;  %v2684_v1 = vadd.f32 1.0, %v4583_v55  ;;  %v2257_v13 = vadd.f32 %v5442_v45, %v5457_v52 }
 0x2f8   :  { %4604 = vrcp.f32 %v2686_v16  ;;  %v5508_v53 = vpop.f32.mrf.mxu1  ;;  %v5516_v0 = vpop.eup %4586  ;;  %v2699_v6 = vadd.f32 1.0, %v4585_v60  ;;  %v2500_v16 = vsub.f32 0.0, %v2262_v3  ;;  %v2482_v60 = vsub.f32 0.0, %v2172_v21 }
 0x2f9   :  { %4606 = vpow2.f32 %v2592_v23  ;;  %v4589_v47 = vpop.eup %4588  ;;  %v2554_v23 = vmul.f32 1.442695, %v2485_v54  ;;  %v2247_v3 = vadd.f32 %v5436_v43, %v5457_v52 }
 0x2fa   :  { %4608 = vrcp.f32 %v2701_v24  ;;  %v5512_v58 = vpop.f32.mrf.mxu1  ;;  %v4591_v34 = vpop.eup %4590  ;;  %v2683_v19 = vadd.f32 1.0, %v4589_v47  ;;  %v2484_v24 = vsub.f32 0.0, %v2182_v9  ;;  %v2584_v55 = vmul.f32 1.442695, %v2500_v16 }
 0x2fb   :  { %4610 = vpow2.f32 %v2560_v40  ;;  %v4593_v7 = vpop.eup %4592  ;;  %v2682_v32 = vadd.f32 1.0, %v4591_v34  ;;  %v2801_v40 = vld [vmem:[%s5707_s1 + $0x6b] sm:$0x1]  ;;  %v2167_v9 = vadd.f32 %v5413_v26, %v5457_v52  ;;  %v2242_v16 = vadd.f32 %v5457_v52, %v5440_v44 }
 0x2fc   :  { %4612 = vrcp.f32 %v2685_v36  ;;  %v5518_v51 = vpop.f32.mrf.mxu1  ;;  %v4595_v11 = vpop.eup %4594  ;;  %v2698_v49 = vadd.f32 1.0, %v4593_v7  ;;  %v2499_v36 = vsub.f32 0.0, %v2257_v13  ;;  %3142 = vperm.xlu0 %4055, %v2801_v40   ;;  %v2552_v33 = vmul.f32 1.442695, %v2484_v24 }
 0x2fd   :  { %4614 = vpow2.f32 %v2590_v56  ;;  %v2481_v21 = vsub.f32 0.0, %v2167_v9  ;;  %v2162_v24 = vadd.f32 %v5457_v52, %v5415_v27  ;;  %v2496_v40 = vsub.f32 0.0, %v2242_v16 }
 0x2fe   :  { %4616 = vrcp.f32 %v2700_v59  ;;  %v5522_v30 = vpop.f32.mrf.mxu1  ;;  %v2675_v16 = vadd.f32 1.0, %v5516_v0  ;;  %v2387_v0 = vadd.f32 %v5512_v58, %v5457_v52 }
 0x2ff   :  { %4618 = vpow2.f32 %v2558_v61 }
 0x300   :  { %4620 = vrcp.f32 %v2684_v1  ;;  %v5526_v35 = vpop.f32.mrf.mxu1  ;;  %v2498_v1 = vsub.f32 0.0, %v2252_v38 }
 0x301   :  { %v4597_v48 = vpop.eup %4596  ;;  %4622 = vpow2.f32 %v2588_v4  ;;  %v2582_v4 = vmul.f32 1.442695, %v2499_v36 }
 0x302   :  { %v4599_v17 = vpop.eup %4598  ;;  %4624 = vrcp.f32 %v2699_v6  ;;  %v5530_v20 = vpop.f32.mrf.mxu1  ;;  %3673 = vmatprep.subr.msk.mxu0 %vm2802_vm4, %v4597_v48 }
 0x303   :  { %v4601_v31 = vpop.eup %4600  ;;  %4626 = vpow2.f32 %v2556_v10  ;;  %3674 = vmatpush3.xpose.msk.msra.mxu0 %vm2802_vm4, %v4595_v11  ;;  %v2697_v57 = vadd.f32 1.0, %v4599_v17  ;;  %v2548_v10 = vmul.f32 1.442695, %v2482_v60 }
 0x304   :  { %v4603_v45 = vpop.eup %4602  ;;  %4628 = vrcp.f32 %v2683_v19  ;;  %v5538_v28 = vpop.f32.mrf.mxu1  ;;  %3675 = vmatprep.subr.msk.mxu0 %vm2802_vm4, %v4601_v31  ;;  %v2580_v19 = vmul.f32 1.442695, %v2498_v1 }
 0x305   :  { %v4605_v29 = vpop.eup %4604  ;;  %4630 = vpow2.f32 %v2586_v14  ;;  %v2681_v63 = vadd.f32 1.0, %v4603_v45  ;;  %v2497_v14 = vsub.f32 0.0, %v2247_v3 }
 0x306   :  { %v4607_v56 = vpop.eup %4606  ;;  %4632 = vrcp.f32 %v2698_v49  ;;  %v5544_v59 = vpop.f32.mrf.mxu1 }
 0x307   :  { %v4609_v46 = vpop.eup %4608  ;;  %4634 = vpow2.f32 %v2554_v23  ;;  %3676 = vmatpush3.xpose.msk.msra.mxu0 %vm2802_vm4, %v4605_v29  ;;  %v2696_v6 = vadd.f32 1.0, %v4607_v56  ;;  %v2578_v38 = vmul.f32 1.442695, %v2497_v14  ;;  %v2546_v56 = vmul.f32 1.442695, %v2481_v21 }
 0x308   :  { %v4611_v61 = vpop.eup %4610  ;;  %4636 = vrcp.f32 %v2682_v32  ;;  %v5547_v47 = vpop.f32.mrf.mxu1  ;;  %3677 = vmatprep.subr.msk.mxu0 %vm2802_vm4, %v4609_v46 }
 0x309   :  { %v4613_v8 = vpop.eup %4612  ;;  %4638 = vpow2.f32 %v2584_v55  ;;  %v2680_v13 = vadd.f32 1.0, %v4611_v61  ;;  %v2576_v61 = vmul.f32 1.442695, %v2496_v40 }
 0x30a   :  { %v4615_v34 = vpop.eup %4614  ;;  %4640 = vrcp.f32 %v2697_v57  ;;  %v5552_v7 = vpop.f32.mrf.mxu1  ;;  %v2480_v57 = vsub.f32 0.0, %v2162_v24 }
 0x30b   :  { %v4617_v54 = vpop.eup %4616  ;;  %4642 = vpow2.f32 %v2552_v33  ;;  %3678 = vmatpush3.xpose.msk.msra.mxu0 %vm2802_vm4, %v4613_v8  ;;  %v2695_v26 = vadd.f32 1.0, %v4615_v34 }
 0x30c   :  { %v4619_v11 = vpop.eup %4618  ;;  %4644 = vrcp.f32 %v2681_v63  ;;  %v5557_v48 = vpop.f32.mrf.mxu1  ;;  %3679 = vmatprep.subr.msk.mxu0 %vm2802_vm4, %v4617_v54  ;;  %v2397_v63 = vadd.f32 %v5522_v30, %v5457_v52 }
 0x30d   :  { %v4621_v43 = vpop.eup %4620  ;;  %4646 = vpow2.f32 %v2582_v4  ;;  %v2679_v45 = vadd.f32 1.0, %v4619_v11  ;;  %v2392_v11 = vadd.f32 %v5457_v52, %v5526_v35 }
 0x30e   :  { %v4623_v17 = vpop.eup %4622  ;;  %4648 = vrcp.f32 %v2696_v6  ;;  %v5562_v49 = vpop.f32.mrf.mxu1  ;;  %v2544_v6 = vmul.f32 1.442695, %v2480_v57  ;;  %v2527_v30 = vsub.f32 0.0, %v2397_v63  ;;  %v2525_v63 = vsub.f32 0.0, %v2387_v0 }
 0x30f   :  { %v4625_v31 = vpop.eup %4624  ;;  %4650 = vpow2.f32 %v2548_v10  ;;  %3680 = vmatpush3.xpose.msk.msra.mxu0 %vm2802_vm4, %v4621_v43  ;;  %v2694_v36 = vadd.f32 1.0, %v4623_v17  ;;  %v2526_v24 = vsub.f32 0.0, %v2392_v11 }
 0x310   :  { %v4627_v23 = vpop.eup %4626  ;;  %4652 = vpow2.f32 %v2580_v19  ;;  %v5567_v32 = vpop.f32.mrf.mxu1  ;;  %3681 = vmatprep.subr.msk.mxu0 %vm2802_vm4, %v4625_v31  ;;  %v2638_v35 = vmul.f32 1.442695, %v2527_v30 }
 0x311   :  { %v4629_v44 = vpop.eup %4628  ;;  %4654 = vrcp.f32 %v2680_v13  ;;  %v2678_v46 = vadd.f32 1.0, %v4627_v23 }
 0x312   :  { %v4631_v29 = vpop.eup %4630  ;;  %4656 = vrcp.f32 %v2695_v26  ;;  %v5570_v55 = vpop.f32.mrf.mxu1 }
 0x313   :  { %v4633_v50 = vpop.eup %4632  ;;  %3682 = vmatpush3.xpose.msk.msra.mxu0 %vm2802_vm4, %v4629_v44  ;;  %4658 = vrcp.f32 %v2679_v45  ;;  %v2693_v8 = vadd.f32 1.0, %v4631_v29 }
 0x314   :  { %v4635_v27 = vpop.eup %4634  ;;  %v5573_v60 = vpop.f32.mrf.mxu1  ;;  %3683 = vmatprep.subr.msk.mxu0 %vm2802_vm4, %v4633_v50  ;;  %4660 = vpow2.f32 %v2578_v38 }
 0x315   :  { %v4637_v33 = vpop.eup %4636  ;;  %4662 = vrcp.f32 %v2694_v36  ;;  %v2677_v10 = vadd.f32 1.0, %v4635_v27 }
 0x316   :  { %v4639_v1 = vpop.eup %4638  ;;  %v5578_v3 = vpop.f32.mrf.mxu1  ;;  %4664 = vpow2.f32 %v2546_v56 }
 0x317   :  { %v4641_v4 = vpop.eup %4640  ;;  %3684 = vmatpush3.xpose.msk.msra.mxu0 %vm2802_vm4, %v4637_v33  ;;  %4666 = vrcp.f32 %v2678_v46  ;;  %v2692_v43 = vadd.f32 1.0, %v4639_v1  ;;  %v2636_v33 = vmul.f32 1.442695, %v2526_v24  ;;  %v2382_v1 = vadd.f32 %v5457_v52, %v5518_v51 }
 0x318   :  { %v4643_v34 = vpop.eup %4642  ;;  %v5581_v54 = vpop.f32.mrf.mxu1  ;;  %3685 = vmatprep.subr.msk.mxu0 %vm2802_vm4, %v4641_v4  ;;  %4668 = vpow2.f32 %v2576_v61 }
 0x319   :  { %v4645_v9 = vpop.eup %4644  ;;  %4670 = vrcp.f32 %v2693_v8  ;;  %v2676_v31 = vadd.f32 1.0, %v4643_v34 }
 0x31a   :  { %v4647_v19 = vpop.eup %4646  ;;  %v4049_v13 = vpop.f32.mrf.mxu1  ;;  %4672 = vpow2.f32 %v2544_v6 }
 0x31b   :  { %v4649_v14 = vpop.eup %4648  ;;  %v2467_v17 = vadd.f32 %v4049_v13, %v5457_v52  ;;  %3686 = vmatpush3.xpose.msk.msra.mxu0 %vm2802_vm4, %v4645_v9  ;;  %4674 = vrcp.f32 %v2677_v10  ;;  %v2691_v44 = vadd.f32 1.0, %v4647_v19  ;;  %v2457_v10 = vadd.f32 %v5578_v3, %v5457_v52 }
 0x31c   :  { %v4651_v26 = vpop.eup %4650  ;;  %v2461_v21 = vpop.f32.mrf.mxu1  ;;  %3687 = vmatprep.subr.msk.mxu0 %vm2802_vm4, %v4649_v14  ;;  %4676 = vrcp.f32 %v2692_v43  ;;  %v2377_v14 = vadd.f32 %v5504_v25, %v5457_v52  ;;  %v2372_v3 = vadd.f32 %v5457_v52, %v5508_v53 }
 0x31d   :  { %v4653_v23 = vpop.eup %4652  ;;  %4678 = vrcp.f32 %v2675_v16  ;;  %v2674_v29 = vadd.f32 1.0, %v4651_v26  ;;  %v2541_v36 = vsub.f32 0.0, %v2467_v17  ;;  %v2462_v56 = vadd.f32 %v5457_v52, %v2461_v21 }
 0x31e   :  { %v4655_v45 = vpop.eup %4654  ;;  %v4052_v38 = vpop.f32.mrf.mxu1  ;;  %4680 = vrcp.f32 %v2676_v31  ;;  %v2690_v50 = vadd.f32 1.0, %v4653_v23  ;;  %v2634_v16 = vmul.f32 1.442695, %v2525_v63  ;;  %v2524_v17 = vsub.f32 0.0, %v2382_v1 }
 0x31f   :  { %v4657_v40 = vpop.eup %4656  ;;  %3688 = vmatpush3.xpose.msk.msra.mxu0 %vm2802_vm4, %v4655_v45  ;;  %v2477_v27 = vadd.f32 %v4052_v38, %v5457_v52  ;;  %4682 = vpow2.f32 %v2638_v35  ;;  %v2666_v34 = vmul.f32 1.442695, %v2541_v36  ;;  %v2540_v30 = vsub.f32 0.0, %v2462_v56 }
 0x320   :  { %3689 = vmatprep.subr.msk.mxu0 %vm2802_vm4, %v4657_v40  ;;  %v2471_v57 = vpop.f32.mrf.mxu1  ;;  %v4659_v46 = vpop.eup %4658  ;;  %4684 = vrcp.f32 %v2691_v44  ;;  %v2539_v21 = vsub.f32 0.0, %v2457_v10  ;;  %v2452_v23 = vadd.f32 %v5457_v52, %v5581_v54  ;;  %v2523_v44 = vsub.f32 0.0, %v2377_v14 }
 0x321   :  { %v2472_v58 = vadd.f32 %v5457_v52, %v2471_v57  ;;  %v4661_v61 = vpop.eup %4660  ;;  %v2543_v8 = vsub.f32 0.0, %v2477_v27  ;;  %4686 = vrcp.f32 %v2674_v29  ;;  %v2664_v35 = vmul.f32 1.442695, %v2540_v30 }
 0x322   :  { %v4663_v4 = vpop.eup %4662  ;;  %4688 = vrcp.f32 %v2690_v50  ;;  %v2689_v43 = vadd.f32 1.0, %v4661_v61  ;;  %v2632_v0 = vmul.f32 1.442695, %v2524_v17  ;;  %v2522_v53 = vsub.f32 0.0, %v2372_v3 }
 0x323   :  { %v2542_v6 = vsub.f32 0.0, %v2472_v58  ;;  %3690 = vmatpush3.xpose.msk.msra.mxu0 %vm2802_vm4, %v4659_v46  ;;  %v4665_v9 = vpop.eup %4664  ;;  %v2670_v11 = vmul.f32 1.442695, %v2543_v8  ;;  %4690 = vpow2.f32 %v2636_v33  ;;  %v2447_v40 = vadd.f32 %v5570_v55, %v5457_v52 }
 0x324   :  { %3691 = vmatprep.subr.msk.mxu0 %vm2802_vm4, %v4663_v4  ;;  %v4667_v19 = vpop.eup %4666  ;;  %v2673_v31 = vadd.f32 1.0, %v4665_v9  ;;  %v2662_v29 = vmul.f32 1.442695, %v2539_v21  ;;  %v2538_v36 = vsub.f32 0.0, %v2452_v23  ;;  %v2367_v27 = vadd.f32 %v5496_v12, %v5457_v52 }
 0x325   :  { %v2668_v51 = vmul.f32 1.442695, %v2542_v6  ;;  %v4669_v13 = vpop.eup %4668  ;;  %4692 = vpow2.f32 %v2670_v11  ;;  %v2630_v46 = vmul.f32 1.442695, %v2523_v44  ;;  %v2628_v58 = vmul.f32 1.442695, %v2522_v53 }
 0x326   :  { %v4671_v26 = vpop.eup %4670  ;;  %4694 = vpow2.f32 %v2666_v34  ;;  %v2688_v24 = vadd.f32 1.0, %v4669_v13  ;;  %v2537_v55 = vsub.f32 0.0, %v2447_v40  ;;  %v2442_v61 = vadd.f32 %v5457_v52, %v5573_v60 }
 0x327   :  { %3692 = vmatpush3.xpose.msk.msra.mxu0 %vm2802_vm4, %v4667_v19  ;;  %4696 = vpow2.f32 %v2668_v51  ;;  %v4673_v25 = vpop.eup %4672  ;;  %v2660_v1 = vmul.f32 1.442695, %v2538_v36  ;;  %v2521_v4 = vsub.f32 0.0, %v2367_v27  ;;  %v2362_v12 = vadd.f32 %v5457_v52, %v5500_v18 }
 0x328   :  { %3693 = vmatprep.subr.msk.mxu0 %vm2802_vm4, %v4671_v26  ;;  %4698 = vrcp.f32 %v2689_v43  ;;  %v4675_v45 = vpop.eup %4674  ;;  %v2672_v56 = vadd.f32 1.0, %v4673_v25  ;;  %v2437_v60 = vadd.f32 %v5562_v49, %v5457_v52  ;;  %v2658_v10 = vmul.f32 1.442695, %v2537_v55 }
 0x329   :  { %4700 = vpow2.f32 %v2634_v16  ;;  %v4677_v38 = vpop.eup %4676  ;;  %v2536_v30 = vsub.f32 0.0, %v2442_v61  ;;  %v2357_v18 = vadd.f32 %v5488_v2, %v5457_v52  ;;  %v2626_v51 = vmul.f32 1.442695, %v2521_v4 }
 0x32a   :  { %4702 = vrcp.f32 %v2673_v31  ;;  %v4679_v54 = vpop.eup %4678  ;;  %v2520_v13 = vsub.f32 0.0, %v2362_v12  ;;  %v2535_v26 = vsub.f32 0.0, %v2437_v60  ;;  %v2432_v31 = vadd.f32 %v5457_v52, %v5567_v32 }
 0x32b   :  { %3694 = vmatpush3.xpose.msk.msra.mxu0 %vm2802_vm4, %v4675_v45  ;;  %4704 = vpow2.f32 %v2664_v35  ;;  %v4681_v50 = vpop.eup %4680  ;;  %v2656_v3 = vmul.f32 1.442695, %v2536_v30  ;;  %v2519_v35 = vsub.f32 0.0, %v2357_v18  ;;  %v2352_v25 = vadd.f32 %v5457_v52, %v5492_v5 }
 0x32c   :  { %3695 = vmatprep.subr.msk.mxu0 %vm2802_vm4, %v4677_v38  ;;  %4706 = vrcp.f32 %v2688_v24  ;;  %v4683_v57 = vpop.eup %4682  ;;  %v2624_v24 = vmul.f32 1.442695, %v2520_v13  ;;  %v2654_v38 = vmul.f32 1.442695, %v2535_v26  ;;  %v2534_v53 = vsub.f32 0.0, %v2432_v31 }
 0x32d   :  { %4708 = vpow2.f32 %v2632_v0  ;;  %v4685_v33 = vpop.eup %4684  ;;  %v2719_v34 = vadd.f32 1.0, %v4683_v57  ;;  %v2427_v0 = vadd.f32 %v5552_v7, %v5457_v52  ;;  %v2347_v5 = vadd.f32 %v5481_v37, %v5457_v52 }
 0x32e   :  { %v4687_v63 = vpop.eup %4686  ;;  %4710 = vpow2.f32 %v2662_v29  ;;  %v2622_v29 = vmul.f32 1.442695, %v2519_v35  ;;  %v2518_v36 = vsub.f32 0.0, %v2352_v25  ;;  %v2422_v57 = vadd.f32 %v5457_v52, %v5557_v48 }
 0x32f   :  { %3696 = vmatpush3.xpose.msk.msra.mxu0 %vm2802_vm4, %v4681_v50  ;;  %v4689_v8 = vpop.eup %4688  ;;  %4712 = vrcp.f32 %v2672_v56  ;;  %v2533_v27 = vsub.f32 0.0, %v2427_v0  ;;  %v2517_v37 = vsub.f32 0.0, %v2347_v5  ;;  %v2342_v61 = vadd.f32 %v5457_v52, %v5485_v62 }
 0x330   :  { %3697 = vmatprep.subr.msk.mxu0 %vm2802_vm4, %v4685_v33  ;;  %v4691_v6 = vpop.eup %4690  ;;  %4714 = vpow2.f32 %v2630_v46  ;;  %v2652_v46 = vmul.f32 1.442695, %v2534_v53  ;;  %v2417_v4 = vadd.f32 %v5544_v59, %v5457_v52  ;;  %v2337_v60 = vadd.f32 %v5476_v39, %v5457_v52 }
 0x331   :  { %4716 = vpow2.f32 %v2628_v58  ;;  %v2718_v16 = vadd.f32 1.0, %v4691_v6  ;;  %v2650_v12 = vmul.f32 1.442695, %v2533_v27  ;;  %v2516_v30 = vsub.f32 0.0, %v2342_v61 }
 0x332   :  { %v4693_v9 = vpop.eup %4692  ;;  %4718 = vpow2.f32 %v2660_v1  ;;  %v2407_v31 = vadd.f32 %v5530_v20, %v5457_v52  ;;  %v2327_v35 = vadd.f32 %v5468_v15, %v5457_v52  ;;  %v2402_v0 = vadd.f32 %v5457_v52, %v5538_v28 }
 0x333   :  { %3698 = vmatpush3.xpose.msk.msra.mxu0 %vm2802_vm4, %v4679_v54  ;;  %v4695_v11 = vpop.eup %4694  ;;  %v2735_v19 = vadd.f32 1.0, %v4693_v9  ;;  %4720 = vrcp.f32 %v2719_v34  ;;  %v2532_v34 = vsub.f32 0.0, %v2422_v57 }
 0x334   :  { %3699 = vmatprep.subr.msk.mxu0 %vm2802_vm4, %v4689_v8  ;;  %v4697_v43 = vpop.eup %4696  ;;  %v2733_v23 = vadd.f32 1.0, %v4695_v11 }
 0x335   :  { %v4699_v14 = vpop.eup %4698  ;;  %4722 = vrcp.f32 %v2735_v19  ;;  %v2734_v49 = vadd.f32 1.0, %v4697_v43  ;;  %v2531_v19 = vsub.f32 0.0, %v2417_v4  ;;  %v2412_v43 = vadd.f32 %v5457_v52, %v5547_v47 }
 0x336   :  { %v4701_v17 = vpop.eup %4700  ;;  %4724 = vpow2.f32 %v2658_v10  ;;  %v2618_v10 = vmul.f32 1.442695, %v2517_v37  ;;  %v2648_v18 = vmul.f32 1.442695, %v2532_v34 }
 0x337   :  { %3700 = vmatpush3.xpose.msk.msra.mxu0 %vm2802_vm4, %v4687_v63  ;;  %v4703_v21 = vpop.eup %4702  ;;  %4726 = vrcp.f32 %v2734_v49  ;;  %v2717_v44 = vadd.f32 1.0, %v4701_v17  ;;  %v2620_v63 = vmul.f32 1.442695, %v2518_v36  ;;  %v2616_v49 = vmul.f32 1.442695, %v2516_v30 }
 0x338   :  { %3701 = vmatprep.subr.msk.mxu0 %vm2802_vm4, %v4699_v14  ;;  %v4705_v2 = vpop.eup %4704  ;;  %4728 = vpow2.f32 %v2626_v51  ;;  %v2515_v14 = vsub.f32 0.0, %v2337_v60  ;;  %v4842_v36 = vld [vmem:[%s5707_s1 + $0x6a] ss:$0 sm:$0xff] }
 0x339   :  { %v4707_v45 = vpop.eup %4706  ;;  %4730 = vrcp.f32 %v2718_v16  ;;  %v2732_v40 = vadd.f32 1.0, %v4705_v2  ;;  %v2332_v16 = vadd.f32 %v5457_v52, %v5478_v41 }
 0x33a   :  { %v4709_v32 = vpop.eup %4708  ;;  %4732 = vpow2.f32 %v2656_v3  ;;  %v2646_v3 = vmul.f32 1.442695, %v2531_v19  ;;  %v2614_v25 = vmul.f32 1.442695, %v2515_v14 }
 0x33b   :  { %3702 = vmatpush3.xpose.msk.msra.mxu0 %vm2802_vm4, %v4703_v21  ;;  %4734 = vrcp.f32 %v2733_v23  ;;  %v4711_v54 = vpop.eup %4710  ;;  %v2716_v56 = vadd.f32 1.0, %v4709_v32  ;;  %v2530_v21 = vsub.f32 0.0, %v2412_v43  ;;  %v2529_v32 = vsub.f32 0.0, %v2407_v31 }
 0x33c   :  { %3703 = vmatprep.subr.msk.mxu0 %vm2802_vm4, %v4707_v45  ;;  %4736 = vpow2.f32 %v2624_v24  ;;  %v4713_v50 = vpop.eup %4712  ;;  %v2731_v58 = vadd.f32 1.0, %v4711_v54  ;;  %v2514_v24 = vsub.f32 0.0, %v2332_v16  ;;  %v2513_v54 = vsub.f32 0.0, %v2327_v35 }
 0x33d   :  { %4738 = vrcp.f32 %v2717_v44  ;;  %v4715_v7 = vpop.eup %4714  ;;  %v2642_v28 = vmul.f32 1.442695, %v2529_v32 }
 0x33e   :  { %4740 = vpow2.f32 %v2654_v38  ;;  %v4717_v33 = vpop.eup %4716  ;;  %v2715_v8 = vadd.f32 1.0, %v4715_v7  ;;  %v2644_v38 = vmul.f32 1.442695, %v2530_v21  ;;  %v2612_v5 = vmul.f32 1.442695, %v2514_v24 }
 0x33f   :  { %3704 = vmatpush3.xpose.msk.msra.mxu0 %vm2802_vm4, %v4713_v50  ;;  %4742 = vrcp.f32 %v2732_v40  ;;  %v4719_v55 = vpop.eup %4718  ;;  %v2714_v11 = vadd.f32 1.0, %v4717_v33  ;;  %v2322_v50 = vadd.f32 %v4842_v36, %v5472_v22  ;;  %v2528_v7 = vsub.f32 0.0, %v2402_v0 }
 0x340   :  { %4744 = vpow2.f32 %v2622_v29  ;;  %v4721_v1 = vpop.eup %4720  ;;  %v2730_v62 = vadd.f32 1.0, %v4719_v55  ;;  %v2610_v33 = vmul.f32 1.442695, %v2513_v54 }
 0x341   :  { %4746 = vrcp.f32 %v2716_v56  ;;  %v2512_v55 = vsub.f32 0.0, %v2322_v50  ;;  %v2640_v61 = vmul.f32 1.442695, %v2528_v7 }
 0x342   :  { %3706 = vmatmul.mubr.msk.f32.vlgmr.msra.gmra.mxu0 %vm2802_vm4, %v5434_v42  ;;  %v4723_v48 = vpop.eup %4722  ;;  %4748 = vpow2.f32 %v2652_v46 }
 0x343   :  { %3739 = vmatprep.mubr.msk.f32.mxu0 %vm2802_vm4, %v5434_v42  ;;  %v4725_v6 = vpop.eup %4724  ;;  %4750 = vrcp.f32 %v2731_v58  ;;  %3707 = vmatprep.subr.msk.mxu0 %vm2802_vm4, %v4723_v48  ;;  %v2608_v4 = vmul.f32 1.442695, %v2512_v55 }
 0x344   :  { %v4727_v9 = vpop.eup %4726  ;;  %4752 = vpow2.f32 %v2620_v63  ;;  %3708 = vmatpush3.xpose.msk.msra.mxu0 %vm2802_vm4, %v4721_v1  ;;  %v2729_v13 = vadd.f32 1.0, %v4725_v6 }
 0x345   :  { %v4729_v59 = vpop.eup %4728  ;;  %4754 = vrcp.f32 %v2715_v8  ;;  %3709 = vmatprep.subr.msk.mxu0 %vm2802_vm4, %v4727_v9 }
 0x346   :  { %v4731_v42 = vpop.eup %4730  ;;  %4756 = vpow2.f32 %v2650_v12  ;;  %v2713_v26 = vadd.f32 1.0, %v4729_v59 }
 0x347   :  { %v4733_v51 = vpop.eup %4732  ;;  %4758 = vrcp.f32 %v2730_v62 }
 0x348   :  { %v4735_v39 = vpop.eup %4734  ;;  %4760 = vpow2.f32 %v2618_v10  ;;  %3710 = vmatpush3.xpose.msk.msra.mxu0 %vm2802_vm4, %v4731_v42  ;;  %v2728_v2 = vadd.f32 1.0, %v4733_v51 }
 0x349   :  { %v4737_v17 = vpop.eup %4736  ;;  %4762 = vrcp.f32 %v2714_v11  ;;  %3711 = vmatprep.subr.msk.mxu0 %vm2802_vm4, %v4735_v39 }
 0x34a   :  { %v4739_v47 = vpop.eup %4738  ;;  %4764 = vpow2.f32 %v2648_v18  ;;  %v2712_v44 = vadd.f32 1.0, %v4737_v17 }
 0x34b   :  { %v4741_v23 = vpop.eup %4740  ;;  %4766 = vrcp.f32 %v2729_v13 }
 0x34c   :  { %v4743_v41 = vpop.eup %4742  ;;  %4768 = vpow2.f32 %v2616_v49  ;;  %3712 = vmatpush3.xpose.msk.msra.mxu0 %vm2802_vm4, %v4739_v47  ;;  %v2727_v40 = vadd.f32 1.0, %v4741_v23 }
 0x34d   :  { %v4745_v45 = vpop.eup %4744  ;;  %4770 = vrcp.f32 %v2713_v26  ;;  %3713 = vmatprep.subr.msk.mxu0 %vm2802_vm4, %v4743_v41 }
 0x34e   :  { %v4747_v20 = vpop.eup %4746  ;;  %4772 = vpow2.f32 %v2646_v3  ;;  %v2711_v56 = vadd.f32 1.0, %v4745_v45 }
 0x34f   :  { %v4749_v53 = vpop.eup %4748  ;;  %4774 = vrcp.f32 %v2728_v2 }
 0x350   :  { %v4751_v15 = vpop.eup %4750  ;;  %4776 = vpow2.f32 %v2614_v25  ;;  %3714 = vmatpush3.xpose.msk.msra.mxu0 %vm2802_vm4, %v4747_v20  ;;  %v2726_v57 = vadd.f32 1.0, %v4749_v53  ;;  %v4843_v53 = vld [vmem:[%s5707_s1 + $0x60] sm:$0xff] }
 0x351   :  { %v4753_v29 = vpop.eup %4752  ;;  %4778 = vrcp.f32 %v2712_v44  ;;  %3715 = vmatprep.subr.msk.mxu0 %vm2802_vm4, %v4751_v15 }
 0x352   :  { %v4755_v52 = vpop.eup %4754  ;;  %4780 = vpow2.f32 %v2644_v38  ;;  %v2710_v22 = vadd.f32 1.0, %v4753_v29 }
 0x353   :  { %v4757_v27 = vpop.eup %4756  ;;  %4782 = vrcp.f32 %v2727_v40 }
 0x354   :  { %v4759_v46 = vpop.eup %4758  ;;  %4784 = vpow2.f32 %v2612_v5  ;;  %3716 = vmatpush3.xpose.msk.msra.mxu0 %vm2802_vm4, %v4755_v52  ;;  %v2725_v1 = vadd.f32 1.0, %v4757_v27 }
 0x355   :  { %v4761_v58 = vpop.eup %4760  ;;  %4786 = vrcp.f32 %v2711_v56  ;;  %3717 = vmatprep.subr.msk.mxu0 %vm2802_vm4, %v4759_v46 }
 0x356   :  { %v4763_v37 = vpop.eup %4762  ;;  %4788 = vpow2.f32 %v2642_v28  ;;  %v2709_v34 = vadd.f32 1.0, %v4761_v58 }
 0x357   :  { %v4765_v63 = vpop.eup %4764  ;;  %4790 = vrcp.f32 %v2726_v57 }
 0x358   :  { %v4767_v8 = vpop.eup %4766  ;;  %4792 = vpow2.f32 %v2610_v33  ;;  %3718 = vmatpush3.xpose.msk.msra.mxu0 %vm2802_vm4, %v4763_v37  ;;  %v2724_v62 = vadd.f32 1.0, %v4765_v63 }
 0x359   :  { %v4769_v48 = vpop.eup %4768  ;;  %4794 = vrcp.f32 %v2710_v22  ;;  %3719 = vmatprep.subr.msk.mxu0 %vm2802_vm4, %v4767_v8 }
 0x35a   :  { %v4771_v12 = vpop.eup %4770  ;;  %4796 = vpow2.f32 %v2640_v61  ;;  %v2708_v30 = vadd.f32 1.0, %v4769_v48 }
 0x35b   :  { %v4773_v6 = vpop.eup %4772  ;;  %4798 = vrcp.f32 %v2725_v1 }
 0x35c   :  { %v4775_v9 = vpop.eup %4774  ;;  %3720 = vmatpush3.xpose.msk.msra.mxu0 %vm2802_vm4, %v4771_v12  ;;  %4800 = vpow2.f32 %v2608_v4  ;;  %v2723_v11 = vadd.f32 1.0, %v4773_v6  ;;  %v4845_v12 = vmov 1966171168   ;;  %v3178_v6 = vlaneseq }
 0x35d   :  { %v4777_v60 = vpop.eup %4776  ;;  %3721 = vmatprep.subr.msk.mxu0 %vm2802_vm4, %v4775_v9  ;;  %4802 = vrcp.f32 %v2709_v34  ;;  %v3176_v34 = vunpack.c.l.s4 %v4845_v12 }
 0x35e   :  { %v4779_v10 = vpop.eup %4778  ;;  %4804 = vrcp.f32 %v2724_v62  ;;  %v2707_v18 = vadd.f32 1.0, %v4777_v60  ;;  %v3179_v60 = vshrl.u32 %v3178_v6, 7  ;;  %vm3200_vm5 = vcmp.lt.s32.totalorder %v3178_v6, 512 }
 0x35f   :  { %v4781_v59 = vpop.eup %4780  ;;  %4806 = vrcp.f32 %v2708_v30  ;;  %v3177_v9 = vunpack.c.0.s8 %v3176_v34 }
 0x360   :  { %v4783_v42 = vpop.eup %4782  ;;  %3722 = vmatpush3.xpose.msk.msra.mxu0 %vm2802_vm4, %v4779_v10  ;;  %4808 = vrcp.f32 %v2723_v11  ;;  %v2722_v13 = vadd.f32 1.0, %v4781_v59 }
 0x361   :  { %v4785_v19 = vpop.eup %4784  ;;  %3723 = vmatprep.subr.msk.mxu0 %vm2802_vm4, %v4783_v42  ;;  %4810 = vrcp.f32 %v2707_v18  ;;  %v3180_v59 = vsub.s32 %v3177_v9, %v3179_v60 }
 0x362   :  { %v4787_v43 = vpop.eup %4786  ;;  %v2706_v49 = vadd.f32 1.0, %v4785_v19  ;;  %4812 = vrcp.f32 %v2722_v13 }
 0x363   :  { %v4789_v51 = vpop.eup %4788 }
 0x364   :  { %v4791_v39 = vpop.eup %4790  ;;  %3724 = vmatpush3.xpose.msk.msra.mxu0 %vm2802_vm4, %v4787_v43  ;;  %v2721_v26 = vadd.f32 1.0, %v4789_v51  ;;  %4814 = vrcp.f32 %v2706_v49 }
 0x365   :  { %v4793_v14 = vpop.eup %4792  ;;  %3725 = vmatprep.subr.msk.mxu0 %vm2802_vm4, %v4791_v39 }
 0x366   :  { %v4795_v16 = vpop.eup %4794  ;;  %v2705_v3 = vadd.f32 1.0, %v4793_v14  ;;  %4816 = vrcp.f32 %v2721_v26 }
 0x367   :  { %v4797_v17 = vpop.eup %4796 }
 0x368   :  { %v4799_v47 = vpop.eup %4798  ;;  %3726 = vmatpush3.xpose.msk.msra.mxu0 %vm2802_vm4, %v4795_v16  ;;  %v2720_v23 = vadd.f32 1.0, %v4797_v17  ;;  %4818 = vrcp.f32 %v2705_v3 }
 0x369   :  { %3727 = vmatprep.subr.msk.mxu0 %vm2802_vm4, %v4799_v47  ;;  %v4801_v31 = vpop.eup %4800 }
 0x36a   :  { %v4803_v21 = vpop.eup %4802  ;;  %v2704_v41 = vadd.f32 1.0, %v4801_v31  ;;  %4820 = vrcp.f32 %v2720_v23 }
 0x36b   :  { %v4805_v2 = vpop.eup %4804 }
 0x36c   :  { %3728 = vmatpush3.xpose.msk.msra.mxu0 %vm2802_vm4, %v4803_v21  ;;  %v4807_v35 = vpop.eup %4806  ;;  %4822 = vrcp.f32 %v2704_v41 }
 0x36d   :  { %3729 = vmatprep.subr.msk.mxu0 %vm2802_vm4, %v4805_v2  ;;  %v4809_v25 = vpop.eup %4808 }
 0x36e   :  { %v4811_v24 = vpop.eup %4810 }
 0x36f   :  { %v4813_v45 = vpop.eup %4812 }
 0x370   :  { %3730 = vmatpush3.xpose.msk.msra.mxu0 %vm2802_vm4, %v4807_v35 }
 0x371   :  { %3731 = vmatprep.subr.msk.mxu0 %vm2802_vm4, %v4809_v25  ;;  %v4815_v44 = vpop.eup %4814 }
 0x373   :  { %v4817_v20 = vpop.eup %4816 }
 0x374   :  { %3732 = vmatpush3.xpose.msk.msra.mxu0 %vm2802_vm4, %v4811_v24 }
 0x375   :  { %3733 = vmatprep.subr.msk.mxu0 %vm2802_vm4, %v4813_v45  ;;  %v4819_v32 = vpop.eup %4818 }
 0x377   :  { %v4821_v0 = vpop.eup %4820  ;;  %v3143_v15 = vpop.permute.xlu0 %3142 }
 0x378   :  { %3734 = vmatpush3.xpose.msk.msra.mxu0 %vm2802_vm4, %v4815_v44 }
 0x379   :  { %3735 = vmatprep.subr.msk.mxu0 %vm2802_vm4, %v4817_v20  ;;  %v4823_v38 = vpop.eup %4822 }
 0x37c   :  { %3736 = vmatpush3.xpose.msk.msra.mxu0 %vm2802_vm4, %v4819_v32 }
 0x37d   :  { %3737 = vmatprep.subr.msk.mxu0 %vm2802_vm4, %v4821_v0 }
 0x380   :  { %3738 = vmatpush3.xpose.msk.msra.mxu0 %vm2802_vm4, %v4823_v38 }
 0x383   :  { %3740 = vmatmul.mubr.msk.f32.vlgmr.msra.gmra.mxu0 %vm2802_vm4, %v4843_v53 }
 0x402   :  { %v3064_v40 = vpop.f32.mrf.mxu0 }
 0x403   :  { %v3145_v5 = vadd.f32 %v3143_v15, %v3064_v40 }
 0x404   :  { %v3066_v54 = vpop.f32.mrf.mxu0 }
 0x405   :  { %v3146_v29 = vadd.f32 %v3143_v15, %v3066_v54  ;;  %v3149_v36 = vsub.f32 0.0, %v3145_v5 }
 0x407   :  { %v3150_v50 = vsub.f32 0.0, %v3146_v29  ;;  %v3153_v56 = vmul.f32 1.442695, %v3149_v36 }
 0x409   :  { %v3155_v52 = vmul.f32 1.442695, %v3150_v50  ;;  %4824 = vpow2.f32 %v3153_v56 }
 0x40b   :  { %4826 = vpow2.f32 %v3155_v52 }
 0x416   :  { %v4825_v22 = vpop.eup %4824 }
 0x417   :  { %v3161_v61 = vadd.f32 1.0, %v4825_v22 }
 0x418   :  { %v4827_v37 = vpop.eup %4826 }
 0x419   :  { %v3162_v63 = vadd.f32 1.0, %v4827_v37 }
 0x443   :  { %v3135_v28 = vpop.f32.mrf.mxu0 }
 0x444   :  { %v3147_v7 = vadd.f32 %v3143_v15, %v3135_v28 }
 0x445   :  { %v3137_v27 = vpop.f32.mrf.mxu0 }
 0x446   :  { %v3151_v57 = vsub.f32 0.0, %v3147_v7  ;;  %v3148_v46 = vadd.f32 %v3143_v15, %v3137_v27 }
 0x448   :  { %v3157_v33 = vmul.f32 1.442695, %v3151_v57  ;;  %v3152_v58 = vsub.f32 0.0, %v3148_v46 }
 0x44a   :  { %4828 = vpow2.f32 %v3157_v33  ;;  %v3159_v55 = vmul.f32 1.442695, %v3152_v58 }
 0x44c   :  { %4830 = vpow2.f32 %v3159_v55 }
 0x44d   :  { %4832 = vrcp.f32 %v3161_v61 }
 0x44e   :  { %4834 = vrcp.f32 %v3162_v63 }
 0x457   :  { %v4829_v1 = vpop.eup %4828 }
 0x458   :  { %v3163_v8 = vadd.f32 1.0, %v4829_v1 }
 0x459   :  { %v4831_v48 = vpop.eup %4830 }
 0x45a   :  { %v3164_v4 = vadd.f32 1.0, %v4831_v48  ;;  %4836 = vrcp.f32 %v3163_v8  ;;  %v4833_v62 = vpop.eup %4832 }
 0x45b   :  { %v4835_v10 = vpop.eup %4834 }
 0x45c   :  { %4838 = vrcp.f32 %v3164_v4  ;;  %v3173_v11 = vcombine.low %v4833_v62, %v4835_v10 }
 0x45e   :  { %v3181_v43 = vrot.slane %v3173_v11, %v3180_v59 }
 0x467   :  { %v4837_v30 = vpop.eup %4836 }
 0x469   :  { %v4839_v42 = vpop.eup %4838 }
 0x46a   :  { %v3174_v19 = vcombine.low %v4837_v30, %v4839_v42 }
 0x46c   :  { %v3188_v18 = vrot.slane %v3174_v19, %v3180_v59 }
 0x46e   :  { %v3189_v51 = vcombine.low %v3181_v43, %v3188_v18 }
 0x470   :  { %v3196_v13 = vrot.slane %v3189_v51, %v3180_v59 }
 0x472   :  { %3202 = vst.msk [vmem:[%s5709_s2] sm:$0xf] %vm3200_vm5, %v3196_v13 }

</bundles_post_ra>
